<compile_context>
chip_gen: v7x
topology: tpu7x:2x2x1
jax: 0.10.0
libtpu: 0.0.40
codegen_flags: <defaults>
</compile_context>

<pallas_src>
import math
import functools

import jax
import jax.numpy as jnp
from jax import lax
from jax.experimental import pallas as pl
from jax.experimental.pallas import tpu as pltpu


# ----------------------------------------------------------------------------
# helpers
# ----------------------------------------------------------------------------
def _vmem_limit_bytes():
    """Scoped-VMEM cap: ~3/4 of physical when queryable, else known-good 32MiB."""
    try:
        info = pltpu.get_tpu_info()
        cap = getattr(info, "vmem_capacity_bytes", None) or getattr(info, "vmem_bytes", None)
        if cap:
            return int(min(100 * 1024 * 1024, (int(cap) * 3) // 4))
    except Exception:
        pass
    return 32 * 1024 * 1024


def _layer_norm(x, w, b, eps=1e-5):
    mu = jnp.mean(x, axis=-1, keepdims=True)
    var = jnp.mean((x - mu) ** 2, axis=-1, keepdims=True)
    return (x - mu) * lax.rsqrt(var + eps) * w + b


def _pick_batch_block(B, L, D, H, dim_ff, vmem_budget):
    """Largest divisor of B whose rough live-VMEM estimate fits the budget."""
    def est(bt):
        rows = bt * L
        acc = rows * D * 4                                   # resident f32 scratch
        act = rows * (3 * D) * 4 + rows * max(dim_ff, D) * 4  # qkv + ffn transients
        scores = bt * H * L * L * 4 * 2                      # s + p (f32)
        wts = 2 * (D * 3 * D + D * D + 2 * D * dim_ff) * 2   # dbl-buffered bf16 weights
        io = 2 * 2 * rows * D * 4                            # in/out blocks, dbl-buffered
        return acc + act + scores + wts + io

    bt = max(1, min(B, max(1, 512 // max(L, 1))))            # target ~512 MXU rows
    while B % bt:
        bt -= 1
    while bt > 1 and est(bt) > vmem_budget:
        bt -= 1
        while B % bt:
            bt -= 1
    # NOTE: on v7x (2 TensorCores) keeping >=2 blocks on the parallel batch axis
    # trades weight re-streaming for core parallelism; at demo sizes 1 block is fine.
    return bt


# ----------------------------------------------------------------------------
# Pallas kernels
# ----------------------------------------------------------------------------
def encoder_stack_kernel(x_ref,
                         wqkv_ref, bqkv_ref, wo_ref, bo_ref,
                         w1_ref, b1_ref, w2_ref, b2_ref,
                         ln1w_ref, ln1b_ref, ln2w_ref, ln2b_ref,
                         out_ref, acc_ref, *, n_heads):
    """Grid = (batch_block, layer).  Runs one post-LN encoder layer per grid step,
    carrying the (Bt, L, D) activation in VMEM scratch across the layer axis."""
    layer = pl.program_id(1)
    n_layer = pl.num_programs(1)

    @pl.when(layer == 0)
    def _():
        acc_ref[...] = x_ref[...]                 # load residual stream

    x = acc_ref[...]                              # (Bt, L, D) float32
    Bt, L, D = x.shape
    H = n_heads
    hd = D // H

    x2d = x.reshape(Bt * L, D)
    xb = x2d.astype(jnp.bfloat16)

    # ---- fused QKV projection (1/sqrt(hd) already folded into Q weights/bias) ----
    qkv = jnp.dot(xb, wqkv_ref[0],
                  preferred_element_type=jnp.float32) + bqkv_ref[0]   # (Bt*L, 3D) f32
    q, k, v = qkv[:, :D], qkv[:, D:2 * D], qkv[:, 2 * D:]

    def to_heads(t):                              # (Bt*L, D) -> (Bt*H, L, hd)
        t = t.astype(jnp.bfloat16).reshape(Bt, L, H, hd)
        t = pltpu.einshape("blhd->bhld", t)       # XLU transpose, minor dim fixed
        return t.reshape(Bt * H, L, hd)

    qh, kh, vh = to_heads(q), to_heads(k), to_heads(v)

    # batched scores + in-kernel causal mask + f32 softmax
    s = jnp.einsum('hqd,hkd->hqk', qh, kh,
                   preferred_element_type=jnp.float32)                # (Bt*H, L, L)
    row = lax.broadcasted_iota(jnp.int32, (L, L), 0)
    col = lax.broadcasted_iota(jnp.int32, (L, L), 1)
    s = jnp.where((row >= col)[None, :, :], s, -1e30)

    s = s - jnp.max(s, axis=-1, keepdims=True)
    p = jnp.exp(s)   # f32 exp keeps v5e parity; bf16 exp is a v6e/v7x-only EUP win
    p = p * pl.reciprocal(jnp.sum(p, axis=-1, keepdims=True), approx=True)

    ctx = jnp.einsum('hqk,hkd->hqd', p.astype(jnp.bfloat16), vh,
                     preferred_element_type=jnp.float32)              # (Bt*H, L, hd)
    ctx = ctx.astype(jnp.bfloat16).reshape(Bt, H, L, hd)
    ctx = pltpu.einshape("bhld->blhd", ctx).reshape(Bt * L, D)        # merge heads

    attn = jnp.dot(ctx, wo_ref[0],
                   preferred_element_type=jnp.float32) + bo_ref[0]

    # residual + LayerNorm1 (post-LN, PyTorch default)
    x1 = _layer_norm(x2d + attn, ln1w_ref[0], ln1b_ref[0])

    # ---- feed forward: relu(x W1 + b1) W2 + b2 ----
    h1 = jnp.maximum(
        jnp.dot(x1.astype(jnp.bfloat16), w1_ref[0],
                preferred_element_type=jnp.float32) + b1_ref[0], 0.0)
    h2 = jnp.dot(h1.astype(jnp.bfloat16), w2_ref[0],
                 preferred_element_type=jnp.float32) + b2_ref[0]

    x2 = _layer_norm(x1 + h2, ln2w_ref[0], ln2b_ref[0]).reshape(Bt, L, D)

    @pl.when(layer < n_layer - 1)
    def _():
        acc_ref[...] = x2                         # carry to next layer

    @pl.when(layer == n_layer - 1)
    def _():
        out_ref[...] = x2.astype(out_ref.dtype)   # single final store (bf16)


def classifier_kernel(x_ref, w_ref, b_ref, out_ref):
    """Final vocab projection, one (vocab-tile, row-tile) pair per grid step."""
    out_ref[...] = (jnp.dot(x_ref[...], w_ref[...],
                            preferred_element_type=jnp.float32) + b_ref[...])


# ----------------------------------------------------------------------------
# pallas_call wrappers
# ----------------------------------------------------------------------------
def encoder_stack(x, enc, n_heads, n_layers):
    B, L, D = x.shape
    dim_ff = enc["w1_t"].shape[-1]
    vmem = _vmem_limit_bytes()
    Bt = _pick_batch_block(B, L, D, n_heads, dim_ff, int(vmem * 0.6))

    def lw(shape):   # per-layer weight: stream layer `l`'s slab each grid step
        nd = len(shape)
        return pl.BlockSpec((1,) + shape, lambda b, l: (l,) + (0,) * nd)

    in_specs = [
        pl.BlockSpec((Bt, L, D), lambda b, l: (b, 0, 0)),  # activations
        lw((D, 3 * D)), lw((1, 3 * D)),                    # fused QKV
        lw((D, D)), lw((1, D)),                            # out proj
        lw((D, dim_ff)), lw((1, dim_ff)),                  # FFN 1
        lw((dim_ff, D)), lw((1, D)),                       # FFN 2
        lw((1, D)), lw((1, D)), lw((1, D)), lw((1, D)),    # LN1 / LN2
    ]
    return pl.pallas_call(
        functools.partial(encoder_stack_kernel, n_heads=n_heads),
        out_shape=jax.ShapeDtypeStruct((B, L, D), jnp.bfloat16),
        grid=(B // Bt, n_layers),
        in_specs=in_specs,
        out_specs=pl.BlockSpec((Bt, L, D), lambda b, l: (b, 0, 0)),
        scratch_shapes=[pltpu.VMEM((Bt, L, D), jnp.float32)],
        compiler_params=pltpu.CompilerParams(
            dimension_semantics=("parallel", "arbitrary"),
            vmem_limit_bytes=vmem),
    )(x,
      enc["wqkv_t"], enc["bqkv"], enc["wo_t"], enc["bo"],
      enc["w1_t"], enc["b1"], enc["w2_t"], enc["b2"],
      enc["ln1w"], enc["ln1b"], enc["ln2w"], enc["ln2b"])


def classifier(x, w_t, b):
    """x: (B, L, D) bf16 encoder output.  Returns (B, L, V_pad) f32 logits."""
    B, L, D = x.shape
    Vp = w_t.shape[1]                          # padded vocab (multiple of 128)
    M = B * L
    xf = x.reshape(M, D)

    # row (MXU-M) tiling: aim for 256 rows; pad rows to the tile size
    if M >= 256:
        tm = 256
        Mp = pl.cdiv(M, tm) * tm
    else:
        Mp = max(8, ((M + 7) // 8) * 8)
        tm = Mp
    if Mp != M:
        xf = jnp.pad(xf, ((0, Mp - M), (0, 0)))

    vmem = _vmem_limit_bytes()
    tv_max = 512 if vmem < 64 * 1024 * 1024 else 1024   # smaller panels on v7x
    tv = next(t for t in (tv_max, 512, 256, 128) if Vp % t == 0)
    nm, nv = Mp // tm, Vp // tv

    out = pl.pallas_call(
        classifier_kernel,
        out_shape=jax.ShapeDtypeStruct((Mp, Vp), jnp.float32),
        grid=(nv, nm),   # vocab OUTER: each (D, tv) weight panel reused across all row tiles
        in_specs=[pl.BlockSpec((tm, D), lambda v, m: (m, 0)),
                  pl.BlockSpec((D, tv), lambda v, m: (0, v)),
                  pl.BlockSpec((1, tv), lambda v, m: (0, v))],
        out_specs=pl.BlockSpec((tm, tv), lambda v, m: (m, v)),
        compiler_params=pltpu.CompilerParams(
            dimension_semantics=("parallel", "parallel"),
            vmem_limit_bytes=vmem),
    )(xf, w_t, b)
    return out[:M].reshape(B, L, Vp)


def positional_encoding(L, d_model):
    t = jnp.arange(L, dtype=jnp.float32)[:, None]
    f_j = jnp.exp(jnp.arange(0, d_model, 2, dtype=jnp.float32)
                  * (-math.log(10000.0) / d_model))
    pe = jnp.zeros((L, d_model), jnp.float32)
    pe = pe.at[:, 0::2].set(jnp.sin(t * f_j))
    pe = pe.at[:, 1::2].set(jnp.cos(t * f_j))
    return pe


def transformer_lm_forward(x_ids, params):
    # token embedding (gather) + positional encoding: plain-JAX glue.
    x = jnp.take(params["embedding"], x_ids, axis=0)            # (B, L, D) f32
    B, L, D = x.shape
    x = x + positional_encoding(L, D)[None, :, :]
    x = encoder_stack(x, params["enc"], params["n_heads"], params["n_layers"])
    logits = classifier(x, params["cls_w_t"], params["cls_b"])  # (B, L, V_pad)
    return logits[..., :params["vocab_size"]]                   # (B, L, V)


# ----------------------------------------------------------------------------
# Deterministic synthetic parameters (PyTorch-shaped, repacked: linear weights
# transposed to (in, out), QKV fused to (D, 3D) with 1/sqrt(hd) folded into the
# Q block, per-layer tensors stacked with a leading layer axis, matmul weights
# stored in bf16).  dim_feedforward = d_model, matching the module.
# ----------------------------------------------------------------------------
def init_params(key, vocab_size, d_model, n_heads, n_layers):
    dim_ff = d_model
    scale = 1.0 / math.sqrt(d_model // n_heads)

    def nrm(k, shape, std=0.02):
        return (std * jax.random.normal(k, shape)).astype(jnp.float32)

    keys = jax.random.split(key, 2 + n_layers)
    params = {"n_heads": n_heads, "n_layers": n_layers, "vocab_size": vocab_size}
    params["embedding"] = nrm(keys[0], (vocab_size, d_model), 1.0)

    wqkv, bqkv, wo, bo = [], [], [], []
    w1, b1, w2, b2 = [], [], [], []
    ln1w, ln1b, ln2w, ln2b = [], [], [], []
    for li in range(n_layers):
        lk = jax.random.split(keys[2 + li], 4)
        in_proj_w = nrm(lk[0], (3 * d_model, d_model))    # PyTorch (3D, D)
        in_proj_b = jnp.zeros((3 * d_model,), jnp.float32)
        out_proj_w = nrm(lk[1], (d_model, d_model))
        out_proj_b = jnp.zeros((d_model,), jnp.float32)
        lin1_w = nrm(lk[2], (dim_ff, d_model))
        lin1_b = jnp.zeros((dim_ff,), jnp.float32)
        lin2_w = nrm(lk[3], (d_model, dim_ff))
        lin2_b = jnp.zeros((d_model,), jnp.float32)

        # fold attention scale into the Q rows/bias (applied pre-softmax in MHA)
        in_proj_w = jnp.concatenate(
            [in_proj_w[:d_model] * scale, in_proj_w[d_model:]], axis=0)
        in_proj_b = in_proj_b.at[:d_model].multiply(scale)

        wqkv.append(in_proj_w.T.astype(jnp.bfloat16))     # (D, 3D)
        bqkv.append(in_proj_b.reshape(1, 3 * d_model))
        wo.append(out_proj_w.T.astype(jnp.bfloat16))      # (D, D)
        bo.append(out_proj_b.reshape(1, d_model))
        w1.append(lin1_w.T.astype(jnp.bfloat16))          # (D, ff)
        b1.append(lin1_b.reshape(1, dim_ff))
        w2.append(lin2_w.T.astype(jnp.bfloat16))          # (ff, D)
        b2.append(lin2_b.reshape(1, d_model))
        ln1w.append(jnp.ones((1, d_model), jnp.float32))
        ln1b.append(jnp.zeros((1, d_model), jnp.float32))
        ln2w.append(jnp.ones((1, d_model), jnp.float32))
        ln2b.append(jnp.zeros((1, d_model), jnp.float32))

    stk = lambda xs: jnp.stack(xs, axis=0)
    params["enc"] = {
        "wqkv_t": stk(wqkv), "bqkv": stk(bqkv), "wo_t": stk(wo), "bo": stk(bo),
        "w1_t": stk(w1), "b1": stk(b1), "w2_t": stk(w2), "b2": stk(b2),
        "ln1w": stk(ln1w), "ln1b": stk(ln1b), "ln2w": stk(ln2w), "ln2b": stk(ln2b),
    }

    # classifier: pad vocab up to a multiple of 128 (lane-dense stores); padded
    # columns are zero and sliced off in the wrapper.
    v_pad = ((vocab_size + 127) // 128) * 128
    cw = nrm(keys[1], (vocab_size, d_model)).T                     # (D, V)
    cw = jnp.pad(cw, ((0, 0), (0, v_pad - vocab_size)))
    params["cls_w_t"] = cw.astype(jnp.bfloat16)                    # (D, V_pad)
    params["cls_b"] = jnp.zeros((1, v_pad), jnp.float32)
    return params


# ----------------------------------------------------------------------------
if __name__ == "__main__":
    vocab_size, d_model, n_heads, n_layers = 50, 128, 4, 2
    B, L = 2, 8

    key = jax.random.PRNGKey(0)
    k_params, k_ids = jax.random.split(key)
    params = init_params(k_params, vocab_size, d_model, n_heads, n_layers)
    x_ids = jax.random.randint(k_ids, (B, L), 0, vocab_size, dtype=jnp.int32)

    fwd = jax.jit(lambda ids: transformer_lm_forward(ids, params))
    logits = fwd(x_ids)
    jax.block_until_ready(logits)

    assert logits.shape == (B, L, vocab_size), logits.shape
    assert logits.dtype == jnp.float32
    assert bool(jnp.all(jnp.isfinite(logits)))
    print("KERNEL_OK")
</pallas_src>

<mosaic_0001>
module attributes {stable_mosaic.version = 11 : i64} {
  func.func @encoder_stack_kernel(%arg0: i32, %arg1: i32, %arg2: memref<2x8x128xf32, #tpu.memory_space<vmem>>, %arg3: memref<1x128x384xbf16, #tpu.memory_space<vmem>>, %arg4: memref<1x1x384xf32, #tpu.memory_space<vmem>>, %arg5: memref<1x128x128xbf16, #tpu.memory_space<vmem>>, %arg6: memref<1x1x128xf32, #tpu.memory_space<vmem>>, %arg7: memref<1x128x128xbf16, #tpu.memory_space<vmem>>, %arg8: memref<1x1x128xf32, #tpu.memory_space<vmem>>, %arg9: memref<1x128x128xbf16, #tpu.memory_space<vmem>>, %arg10: memref<1x1x128xf32, #tpu.memory_space<vmem>>, %arg11: memref<1x1x128xf32, #tpu.memory_space<vmem>>, %arg12: memref<1x1x128xf32, #tpu.memory_space<vmem>>, %arg13: memref<1x1x128xf32, #tpu.memory_space<vmem>>, %arg14: memref<1x1x128xf32, #tpu.memory_space<vmem>>, %arg15: memref<2x8x128xbf16, #tpu.memory_space<vmem>>, %arg16: memref<2x8x128xf32, #tpu.memory_space<vmem>>) attributes {dimension_semantics = [#tpu.dimension_semantics<parallel>, #tpu.dimension_semantics<arbitrary>], iteration_bounds = array<i64: 1, 2>, scalar_prefetch = 0 : i64, scratch_operands = 1 : i64, tpu.core_type = #tpu.core_type<tc>, window_params = [{transform_indices = @transform_0, window_bounds = array<i64: 2, 8, 128>}, {transform_indices = @transform_1, window_bounds = array<i64: 1, 128, 384>}, {transform_indices = @transform_2, window_bounds = array<i64: 1, 1, 384>}, {transform_indices = @transform_3, window_bounds = array<i64: 1, 128, 128>}, {transform_indices = @transform_4, window_bounds = array<i64: 1, 1, 128>}, {transform_indices = @transform_5, window_bounds = array<i64: 1, 128, 128>}, {transform_indices = @transform_6, window_bounds = array<i64: 1, 1, 128>}, {transform_indices = @transform_7, window_bounds = array<i64: 1, 128, 128>}, {transform_indices = @transform_8, window_bounds = array<i64: 1, 1, 128>}, {transform_indices = @transform_9, window_bounds = array<i64: 1, 1, 128>}, {transform_indices = @transform_10, window_bounds = array<i64: 1, 1, 128>}, {transform_indices = @transform_11, window_bounds = array<i64: 1, 1, 128>}, {transform_indices = @transform_12, window_bounds = array<i64: 1, 1, 128>}, {transform_indices = @transform_13, window_bounds = array<i64: 2, 8, 128>}]} {
    %c0_i32 = arith.constant 0 : i32
    %0 = arith.cmpi eq, %arg1, %c0_i32 : i32
    %1 = arith.extui %0 : i1 to i32
    %c0_i32_0 = arith.constant 0 : i32
    %2 = arith.cmpi ne, %1, %c0_i32_0 : i32
    scf.if %2 {
      %c0_61 = arith.constant 0 : index
      %c0_62 = arith.constant 0 : index
      %c0_63 = arith.constant 0 : index
      %139 = vector.load %arg2[%c0_61, %c0_62, %c0_63] : memref<2x8x128xf32, #tpu.memory_space<vmem>>, vector<2x8x128xf32>
      %c0_64 = arith.constant 0 : index
      %c0_65 = arith.constant 0 : index
      %c0_66 = arith.constant 0 : index
      %140 = vector.load %arg16[%c0_64, %c0_65, %c0_66] : memref<2x8x128xf32, #tpu.memory_space<vmem>>, vector<2x8x128xf32>
      tpu.vector_store %arg16[%c0_64, %c0_65, %c0_66], %139 {strides = array<i32>} : memref<2x8x128xf32, #tpu.memory_space<vmem>>, vector<2x8x128xf32>,
    } else {
    }
    %c0 = arith.constant 0 : index
    %c0_1 = arith.constant 0 : index
    %c0_2 = arith.constant 0 : index
    %3 = vector.load %arg16[%c0, %c0_1, %c0_2] : memref<2x8x128xf32, #tpu.memory_space<vmem>>, vector<2x8x128xf32>
    %4 = vector.shape_cast %3 : vector<2x8x128xf32> to vector<16x128xf32>
    %5 = arith.truncf %4 : vector<16x128xf32> to vector<16x128xbf16>
    %c0_3 = arith.constant 0 : index
    %c0_4 = arith.constant 0 : index
    %c0_5 = arith.constant 0 : index
    %6 = vector.load %arg3[%c0_3, %c0_4, %c0_5] : memref<1x128x384xbf16, #tpu.memory_space<vmem>>, vector<1x128x384xbf16>
    %7 = vector.shape_cast %6 : vector<1x128x384xbf16> to vector<128x384xbf16>
    %cst = arith.constant dense<0.000000e+00> : vector<16x384xf32>
    %8 = tpu.matmul %5, %7, %cst {dimension_numbers = #tpu.dot_dimension_numbers<[1], [0], [0], [1], [0, 0, 1, 1], [], []>} : vector<16x128xbf16>, vector<128x384xbf16>, vector<16x384xf32> -> vector<16x384xf32>
    %c0_6 = arith.constant 0 : index
    %c0_7 = arith.constant 0 : index
    %c0_8 = arith.constant 0 : index
    %9 = vector.load %arg4[%c0_6, %c0_7, %c0_8] : memref<1x1x384xf32, #tpu.memory_space<vmem>>, vector<1x1x384xf32>
    %10 = vector.shape_cast %9 : vector<1x1x384xf32> to vector<1x384xf32>
    %11 = vector.broadcast %10 : vector<1x384xf32> to vector<16x384xf32>
    %12 = arith.addf %8, %11 : vector<16x384xf32>
    %13 = vector.extract_strided_slice %12 {offsets = [0, 0], sizes = [16, 128], strides = [1, 1]} : vector<16x384xf32> to vector<16x128xf32>
    %14 = vector.extract_strided_slice %12 {offsets = [0, 128], sizes = [16, 128], strides = [1, 1]} : vector<16x384xf32> to vector<16x128xf32>
    %15 = vector.extract_strided_slice %12 {offsets = [0, 256], sizes = [16, 128], strides = [1, 1]} : vector<16x384xf32> to vector<16x128xf32>
    %16 = arith.truncf %13 : vector<16x128xf32> to vector<16x128xbf16>
    %17 = vector.shape_cast %16 : vector<16x128xbf16> to vector<2x8x4x32xbf16>
    %18 = tpu.transpose %17, [0, 2, 1, 3] : vector<2x8x4x32xbf16> -> vector<2x4x8x32xbf16>
    %19 = vector.shape_cast %18 : vector<2x4x8x32xbf16> to vector<8x8x32xbf16>
    %20 = arith.truncf %14 : vector<16x128xf32> to vector<16x128xbf16>
    %21 = vector.shape_cast %20 : vector<16x128xbf16> to vector<2x8x4x32xbf16>
    %22 = tpu.transpose %21, [0, 2, 1, 3] : vector<2x8x4x32xbf16> -> vector<2x4x8x32xbf16>
    %23 = vector.shape_cast %22 : vector<2x4x8x32xbf16> to vector<8x8x32xbf16>
    %24 = arith.truncf %15 : vector<16x128xf32> to vector<16x128xbf16>
    %25 = vector.shape_cast %24 : vector<16x128xbf16> to vector<2x8x4x32xbf16>
    %26 = tpu.transpose %25, [0, 2, 1, 3] : vector<2x8x4x32xbf16> -> vector<2x4x8x32xbf16>
    %27 = vector.shape_cast %26 : vector<2x4x8x32xbf16> to vector<8x8x32xbf16>
    "tpu.trace_start"() <{level = 10 : i32, message = "hqd,hkd->hqk"}> : () -> ()
    %cst_9 = arith.constant dense<0.000000e+00> : vector<8x8x8xf32>
    %28 = tpu.matmul %19, %23, %cst_9 {dimension_numbers = #tpu.dot_dimension_numbers<[2], [2], [1], [1], [0, 0, 0, 1, 1, 1], [0], [0]>} : vector<8x8x32xbf16>, vector<8x8x32xbf16>, vector<8x8x8xf32> -> vector<8x8x8xf32>
    "tpu.trace_stop"() : () -> ()
    %29 = tpu.iota {dimensions = array<i32: 0>} : vector<8x8xi32>
    %30 = tpu.iota {dimensions = array<i32: 1>} : vector<8x8xi32>
    %31 = arith.cmpi sge, %29, %30 : vector<8x8xi32>
    %32 = vector.shape_cast %31 : vector<8x8xi1> to vector<1x8x8xi1>
    %cst_10 = arith.constant -1.000000e+30 : f32
    %33 = vector.shape_cast %32 : vector<1x8x8xi1> to vector<1x8x8xi1>
    %34 = vector.broadcast %33 : vector<1x8x8xi1> to vector<8x8x8xi1>
    %35 = vector.broadcast %cst_10 : f32 to vector<8x8x8xf32>
    %36 = arith.select %34, %28, %35 : vector<8x8x8xi1>, vector<8x8x8xf32>
    %cst_11 = arith.constant dense<0xFF800000> : vector<8x8xf32>
    %37 = vector.multi_reduction <maximumf>, %36, %cst_11 [2] : vector<8x8x8xf32> to vector<8x8xf32>
    %38 = vector.shape_cast %37 : vector<8x8xf32> to vector<8x8x1xf32>
    %39 = vector.broadcast %38 : vector<8x8x1xf32> to vector<8x8x8xf32>
    %40 = arith.subf %36, %39 : vector<8x8x8xf32>
    %41 = math.exp %40 : vector<8x8x8xf32>
    %cst_12 = arith.constant dense<0.000000e+00> : vector<8x8xf32>
    %42 = vector.multi_reduction <add>, %41, %cst_12 [2] : vector<8x8x8xf32> to vector<8x8xf32>
    %43 = vector.shape_cast %42 : vector<8x8xf32> to vector<8x8x1xf32>
    %44 = tpu.reciprocal %43 {approx = true} : vector<8x8x1xf32> -> vector<8x8x1xf32>
    %45 = vector.broadcast %44 : vector<8x8x1xf32> to vector<8x8x8xf32>
    %46 = arith.mulf %41, %45 : vector<8x8x8xf32>
    %47 = arith.truncf %46 : vector<8x8x8xf32> to vector<8x8x8xbf16>
    "tpu.trace_start"() <{level = 10 : i32, message = "hqk,hkd->hqd"}> : () -> ()
    %cst_13 = arith.constant dense<0.000000e+00> : vector<8x8x32xf32>
    %48 = tpu.matmul %47, %27, %cst_13 {dimension_numbers = #tpu.dot_dimension_numbers<[2], [1], [1], [2], [0, 0, 0, 1, 1, 2], [0], [0]>} : vector<8x8x8xbf16>, vector<8x8x32xbf16>, vector<8x8x32xf32> -> vector<8x8x32xf32>
    "tpu.trace_stop"() : () -> ()
    %49 = arith.truncf %48 : vector<8x8x32xf32> to vector<8x8x32xbf16>
    %50 = vector.shape_cast %49 : vector<8x8x32xbf16> to vector<2x4x8x32xbf16>
    %51 = tpu.transpose %50, [0, 2, 1, 3] : vector<2x4x8x32xbf16> -> vector<2x8x4x32xbf16>
    %52 = vector.shape_cast %51 : vector<2x8x4x32xbf16> to vector<16x128xbf16>
    %c0_14 = arith.constant 0 : index
    %c0_15 = arith.constant 0 : index
    %c0_16 = arith.constant 0 : index
    %53 = vector.load %arg5[%c0_14, %c0_15, %c0_16] : memref<1x128x128xbf16, #tpu.memory_space<vmem>>, vector<1x128x128xbf16>
    %54 = vector.shape_cast %53 : vector<1x128x128xbf16> to vector<128x128xbf16>
    %cst_17 = arith.constant dense<0.000000e+00> : vector<16x128xf32>
    %55 = tpu.matmul %52, %54, %cst_17 {dimension_numbers = #tpu.dot_dimension_numbers<[1], [0], [0], [1], [0, 0, 1, 1], [], []>} : vector<16x128xbf16>, vector<128x128xbf16>, vector<16x128xf32> -> vector<16x128xf32>
    %c0_18 = arith.constant 0 : index
    %c0_19 = arith.constant 0 : index
    %c0_20 = arith.constant 0 : index
    %56 = vector.load %arg6[%c0_18, %c0_19, %c0_20] : memref<1x1x128xf32, #tpu.memory_space<vmem>>, vector<1x1x128xf32>
    %57 = vector.shape_cast %56 : vector<1x1x128xf32> to vector<1x128xf32>
    %58 = vector.broadcast %57 : vector<1x128xf32> to vector<16x128xf32>
    %59 = arith.addf %55, %58 : vector<16x128xf32>
    %60 = arith.addf %4, %59 : vector<16x128xf32>
    %c0_21 = arith.constant 0 : index
    %c0_22 = arith.constant 0 : index
    %c0_23 = arith.constant 0 : index
    %61 = vector.load %arg11[%c0_21, %c0_22, %c0_23] : memref<1x1x128xf32, #tpu.memory_space<vmem>>, vector<1x1x128xf32>
    %62 = vector.shape_cast %61 : vector<1x1x128xf32> to vector<1x128xf32>
    %c0_24 = arith.constant 0 : index
    %c0_25 = arith.constant 0 : index
    %c0_26 = arith.constant 0 : index
    %63 = vector.load %arg12[%c0_24, %c0_25, %c0_26] : memref<1x1x128xf32, #tpu.memory_space<vmem>>, vector<1x1x128xf32>
    %64 = vector.shape_cast %63 : vector<1x1x128xf32> to vector<1x128xf32>
    %cst_27 = arith.constant dense<0.000000e+00> : vector<16xf32>
    %65 = vector.multi_reduction <add>, %60, %cst_27 [1] : vector<16x128xf32> to vector<16xf32>
    %66 = vector.shape_cast %65 : vector<16xf32> to vector<16x1xf32>
    %cst_28 = arith.constant 1.280000e+02 : f32
    %67 = vector.broadcast %cst_28 : f32 to vector<16x1xf32>
    %68 = arith.divf %66, %67 : vector<16x1xf32>
    %69 = vector.broadcast %68 : vector<16x1xf32> to vector<16x128xf32>
    %70 = arith.subf %60, %69 : vector<16x128xf32>
    %71 = arith.mulf %70, %70 : vector<16x128xf32>
    %cst_29 = arith.constant dense<0.000000e+00> : vector<16xf32>
    %72 = vector.multi_reduction <add>, %71, %cst_29 [1] : vector<16x128xf32> to vector<16xf32>
    %73 = vector.shape_cast %72 : vector<16xf32> to vector<16x1xf32>
    %cst_30 = arith.constant 1.280000e+02 : f32
    %74 = vector.broadcast %cst_30 : f32 to vector<16x1xf32>
    %75 = arith.divf %73, %74 : vector<16x1xf32>
    %76 = vector.broadcast %68 : vector<16x1xf32> to vector<16x128xf32>
    %77 = arith.subf %60, %76 : vector<16x128xf32>
    %cst_31 = arith.constant 9.99999974E-6 : f32
    %78 = vector.broadcast %cst_31 : f32 to vector<16x1xf32>
    %79 = arith.addf %75, %78 : vector<16x1xf32>
    %80 = math.rsqrt %79 : vector<16x1xf32>
    %81 = vector.broadcast %80 : vector<16x1xf32> to vector<16x128xf32>
    %82 = arith.mulf %77, %81 : vector<16x128xf32>
    %83 = vector.broadcast %62 : vector<1x128xf32> to vector<16x128xf32>
    %84 = arith.mulf %82, %83 : vector<16x128xf32>
    %85 = vector.broadcast %64 : vector<1x128xf32> to vector<16x128xf32>
    %86 = arith.addf %84, %85 : vector<16x128xf32>
    %87 = arith.truncf %86 : vector<16x128xf32> to vector<16x128xbf16>
    %c0_32 = arith.constant 0 : index
    %c0_33 = arith.constant 0 : index
    %c0_34 = arith.constant 0 : index
    %88 = vector.load %arg7[%c0_32, %c0_33, %c0_34] : memref<1x128x128xbf16, #tpu.memory_space<vmem>>, vector<1x128x128xbf16>
    %89 = vector.shape_cast %88 : vector<1x128x128xbf16> to vector<128x128xbf16>
    %cst_35 = arith.constant dense<0.000000e+00> : vector<16x128xf32>
    %90 = tpu.matmul %87, %89, %cst_35 {dimension_numbers = #tpu.dot_dimension_numbers<[1], [0], [0], [1], [0, 0, 1, 1], [], []>} : vector<16x128xbf16>, vector<128x128xbf16>, vector<16x128xf32> -> vector<16x128xf32>
    %c0_36 = arith.constant 0 : index
    %c0_37 = arith.constant 0 : index
    %c0_38 = arith.constant 0 : index
    %91 = vector.load %arg8[%c0_36, %c0_37, %c0_38] : memref<1x1x128xf32, #tpu.memory_space<vmem>>, vector<1x1x128xf32>
    %92 = vector.shape_cast %91 : vector<1x1x128xf32> to vector<1x128xf32>
    %93 = vector.broadcast %92 : vector<1x128xf32> to vector<16x128xf32>
    %94 = arith.addf %90, %93 : vector<16x128xf32>
    %cst_39 = arith.constant 0.000000e+00 : f32
    %95 = vector.broadcast %cst_39 : f32 to vector<16x128xf32>
    %96 = arith.maximumf %94, %95 : vector<16x128xf32>
    %97 = arith.truncf %96 : vector<16x128xf32> to vector<16x128xbf16>
    %c0_40 = arith.constant 0 : index
    %c0_41 = arith.constant 0 : index
    %c0_42 = arith.constant 0 : index
    %98 = vector.load %arg9[%c0_40, %c0_41, %c0_42] : memref<1x128x128xbf16, #tpu.memory_space<vmem>>, vector<1x128x128xbf16>
    %99 = vector.shape_cast %98 : vector<1x128x128xbf16> to vector<128x128xbf16>
    %cst_43 = arith.constant dense<0.000000e+00> : vector<16x128xf32>
    %100 = tpu.matmul %97, %99, %cst_43 {dimension_numbers = #tpu.dot_dimension_numbers<[1], [0], [0], [1], [0, 0, 1, 1], [], []>} : vector<16x128xbf16>, vector<128x128xbf16>, vector<16x128xf32> -> vector<16x128xf32>
    %c0_44 = arith.constant 0 : index
    %c0_45 = arith.constant 0 : index
    %c0_46 = arith.constant 0 : index
    %101 = vector.load %arg10[%c0_44, %c0_45, %c0_46] : memref<1x1x128xf32, #tpu.memory_space<vmem>>, vector<1x1x128xf32>
    %102 = vector.shape_cast %101 : vector<1x1x128xf32> to vector<1x128xf32>
    %103 = vector.broadcast %102 : vector<1x128xf32> to vector<16x128xf32>
    %104 = arith.addf %100, %103 : vector<16x128xf32>
    %105 = arith.addf %86, %104 : vector<16x128xf32>
    %c0_47 = arith.constant 0 : index
    %c0_48 = arith.constant 0 : index
    %c0_49 = arith.constant 0 : index
    %106 = vector.load %arg13[%c0_47, %c0_48, %c0_49] : memref<1x1x128xf32, #tpu.memory_space<vmem>>, vector<1x1x128xf32>
    %107 = vector.shape_cast %106 : vector<1x1x128xf32> to vector<1x128xf32>
    %c0_50 = arith.constant 0 : index
    %c0_51 = arith.constant 0 : index
    %c0_52 = arith.constant 0 : index
    %108 = vector.load %arg14[%c0_50, %c0_51, %c0_52] : memref<1x1x128xf32, #tpu.memory_space<vmem>>, vector<1x1x128xf32>
    %109 = vector.shape_cast %108 : vector<1x1x128xf32> to vector<1x128xf32>
    %cst_53 = arith.constant dense<0.000000e+00> : vector<16xf32>
    %110 = vector.multi_reduction <add>, %105, %cst_53 [1] : vector<16x128xf32> to vector<16xf32>
    %111 = vector.shape_cast %110 : vector<16xf32> to vector<16x1xf32>
    %cst_54 = arith.constant 1.280000e+02 : f32
    %112 = vector.broadcast %cst_54 : f32 to vector<16x1xf32>
    %113 = arith.divf %111, %112 : vector<16x1xf32>
    %114 = vector.broadcast %113 : vector<16x1xf32> to vector<16x128xf32>
    %115 = arith.subf %105, %114 : vector<16x128xf32>
    %116 = arith.mulf %115, %115 : vector<16x128xf32>
    %cst_55 = arith.constant dense<0.000000e+00> : vector<16xf32>
    %117 = vector.multi_reduction <add>, %116, %cst_55 [1] : vector<16x128xf32> to vector<16xf32>
    %118 = vector.shape_cast %117 : vector<16xf32> to vector<16x1xf32>
    %cst_56 = arith.constant 1.280000e+02 : f32
    %119 = vector.broadcast %cst_56 : f32 to vector<16x1xf32>
    %120 = arith.divf %118, %119 : vector<16x1xf32>
    %121 = vector.broadcast %113 : vector<16x1xf32> to vector<16x128xf32>
    %122 = arith.subf %105, %121 : vector<16x128xf32>
    %cst_57 = arith.constant 9.99999974E-6 : f32
    %123 = vector.broadcast %cst_57 : f32 to vector<16x1xf32>
    %124 = arith.addf %120, %123 : vector<16x1xf32>
    %125 = math.rsqrt %124 : vector<16x1xf32>
    %126 = vector.broadcast %125 : vector<16x1xf32> to vector<16x128xf32>
    %127 = arith.mulf %122, %126 : vector<16x128xf32>
    %128 = vector.broadcast %107 : vector<1x128xf32> to vector<16x128xf32>
    %129 = arith.mulf %127, %128 : vector<16x128xf32>
    %130 = vector.broadcast %109 : vector<1x128xf32> to vector<16x128xf32>
    %131 = arith.addf %129, %130 : vector<16x128xf32>
    %132 = vector.shape_cast %131 : vector<16x128xf32> to vector<2x8x128xf32>
    %c1_i32 = arith.constant 1 : i32
    %133 = arith.cmpi slt, %arg1, %c1_i32 : i32
    %134 = arith.extui %133 : i1 to i32
    %c0_i32_58 = arith.constant 0 : i32
    %135 = arith.cmpi ne, %134, %c0_i32_58 : i32
    scf.if %135 {
      %c0_61 = arith.constant 0 : index
      %c0_62 = arith.constant 0 : index
      %c0_63 = arith.constant 0 : index
      %139 = vector.load %arg16[%c0_61, %c0_62, %c0_63] : memref<2x8x128xf32, #tpu.memory_space<vmem>>, vector<2x8x128xf32>
      tpu.vector_store %arg16[%c0_61, %c0_62, %c0_63], %132 {strides = array<i32>} : memref<2x8x128xf32, #tpu.memory_space<vmem>>, vector<2x8x128xf32>,
    } else {
    }
    %c1_i32_59 = arith.constant 1 : i32
    %136 = arith.cmpi eq, %arg1, %c1_i32_59 : i32
    %137 = arith.extui %136 : i1 to i32
    %c0_i32_60 = arith.constant 0 : i32
    %138 = arith.cmpi ne, %137, %c0_i32_60 : i32
    scf.if %138 {
      %139 = arith.truncf %132 : vector<2x8x128xf32> to vector<2x8x128xbf16>
      %c0_61 = arith.constant 0 : index
      %c0_62 = arith.constant 0 : index
      %c0_63 = arith.constant 0 : index
      %140 = vector.load %arg15[%c0_61, %c0_62, %c0_63] : memref<2x8x128xbf16, #tpu.memory_space<vmem>>, vector<2x8x128xbf16>
      tpu.vector_store %arg15[%c0_61, %c0_62, %c0_63], %139 {strides = array<i32>} : memref<2x8x128xbf16, #tpu.memory_space<vmem>>, vector<2x8x128xbf16>,
    } else {
    }
    return
  }
  func.func @transform_0(%arg0: i32, %arg1: i32) -> (i32, i32, i32) {
    %c0_i32 = arith.constant 0 : i32
    %c0_i32_0 = arith.constant 0 : i32
    %c0_i32_1 = arith.constant 0 : i32
    return %arg0, %c0_i32, %c0_i32_0 : i32, i32, i32
  }
  func.func @transform_1(%arg0: i32, %arg1: i32) -> (i32, i32, i32) {
    %c0_i32 = arith.constant 0 : i32
    %c0_i32_0 = arith.constant 0 : i32
    %c0_i32_1 = arith.constant 0 : i32
    return %arg1, %c0_i32, %c0_i32_0 : i32, i32, i32
  }
  func.func @transform_2(%arg0: i32, %arg1: i32) -> (i32, i32, i32) {
    %c0_i32 = arith.constant 0 : i32
    %c0_i32_0 = arith.constant 0 : i32
    %c0_i32_1 = arith.constant 0 : i32
    return %arg1, %c0_i32, %c0_i32_0 : i32, i32, i32
  }
  func.func @transform_3(%arg0: i32, %arg1: i32) -> (i32, i32, i32) {
    %c0_i32 = arith.constant 0 : i32
    %c0_i32_0 = arith.constant 0 : i32
    %c0_i32_1 = arith.constant 0 : i32
    return %arg1, %c0_i32, %c0_i32_0 : i32, i32, i32
  }
  func.func @transform_4(%arg0: i32, %arg1: i32) -> (i32, i32, i32) {
    %c0_i32 = arith.constant 0 : i32
    %c0_i32_0 = arith.constant 0 : i32
    %c0_i32_1 = arith.constant 0 : i32
    return %arg1, %c0_i32, %c0_i32_0 : i32, i32, i32
  }
  func.func @transform_5(%arg0: i32, %arg1: i32) -> (i32, i32, i32) {
    %c0_i32 = arith.constant 0 : i32
    %c0_i32_0 = arith.constant 0 : i32
    %c0_i32_1 = arith.constant 0 : i32
    return %arg1, %c0_i32, %c0_i32_0 : i32, i32, i32
  }
  func.func @transform_6(%arg0: i32, %arg1: i32) -> (i32, i32, i32) {
    %c0_i32 = arith.constant 0 : i32
    %c0_i32_0 = arith.constant 0 : i32
    %c0_i32_1 = arith.constant 0 : i32
    return %arg1, %c0_i32, %c0_i32_0 : i32, i32, i32
  }
  func.func @transform_7(%arg0: i32, %arg1: i32) -> (i32, i32, i32) {
    %c0_i32 = arith.constant 0 : i32
    %c0_i32_0 = arith.constant 0 : i32
    %c0_i32_1 = arith.constant 0 : i32
    return %arg1, %c0_i32, %c0_i32_0 : i32, i32, i32
  }
  func.func @transform_8(%arg0: i32, %arg1: i32) -> (i32, i32, i32) {
    %c0_i32 = arith.constant 0 : i32
    %c0_i32_0 = arith.constant 0 : i32
    %c0_i32_1 = arith.constant 0 : i32
    return %arg1, %c0_i32, %c0_i32_0 : i32, i32, i32
  }
  func.func @transform_9(%arg0: i32, %arg1: i32) -> (i32, i32, i32) {
    %c0_i32 = arith.constant 0 : i32
    %c0_i32_0 = arith.constant 0 : i32
    %c0_i32_1 = arith.constant 0 : i32
    return %arg1, %c0_i32, %c0_i32_0 : i32, i32, i32
  }
  func.func @transform_10(%arg0: i32, %arg1: i32) -> (i32, i32, i32) {
    %c0_i32 = arith.constant 0 : i32
    %c0_i32_0 = arith.constant 0 : i32
    %c0_i32_1 = arith.constant 0 : i32
    return %arg1, %c0_i32, %c0_i32_0 : i32, i32, i32
  }
  func.func @transform_11(%arg0: i32, %arg1: i32) -> (i32, i32, i32) {
    %c0_i32 = arith.constant 0 : i32
    %c0_i32_0 = arith.constant 0 : i32
    %c0_i32_1 = arith.constant 0 : i32
    return %arg1, %c0_i32, %c0_i32_0 : i32, i32, i32
  }
  func.func @transform_12(%arg0: i32, %arg1: i32) -> (i32, i32, i32) {
    %c0_i32 = arith.constant 0 : i32
    %c0_i32_0 = arith.constant 0 : i32
    %c0_i32_1 = arith.constant 0 : i32
    return %arg1, %c0_i32, %c0_i32_0 : i32, i32, i32
  }
  func.func @transform_13(%arg0: i32, %arg1: i32) -> (i32, i32, i32) {
    %c0_i32 = arith.constant 0 : i32
    %c0_i32_0 = arith.constant 0 : i32
    %c0_i32_1 = arith.constant 0 : i32
    return %arg0, %c0_i32, %c0_i32_0 : i32, i32, i32
  }
}

module attributes {stable_mosaic.version = 11 : i64} {
  func.func @classifier_kernel(%arg0: i32, %arg1: i32, %arg2: memref<16x128xbf16, #tpu.memory_space<vmem>>, %arg3: memref<128x128xbf16, #tpu.memory_space<vmem>>, %arg4: memref<1x128xf32, #tpu.memory_space<vmem>>, %arg5: memref<16x128xf32, #tpu.memory_space<vmem>>) attributes {dimension_semantics = [#tpu.dimension_semantics<parallel>, #tpu.dimension_semantics<parallel>], iteration_bounds = array<i64: 1, 1>, scalar_prefetch = 0 : i64, scratch_operands = 0 : i64, tpu.core_type = #tpu.core_type<tc>, window_params = [{transform_indices = @transform_0, window_bounds = array<i64: 16, 128>}, {transform_indices = @transform_1, window_bounds = array<i64: 128, 128>}, {transform_indices = @transform_2, window_bounds = array<i64: 1, 128>}, {transform_indices = @transform_3, window_bounds = array<i64: 16, 128>}]} {
    %c0 = arith.constant 0 : index
    %c0_0 = arith.constant 0 : index
    %0 = vector.load %arg2[%c0, %c0_0] : memref<16x128xbf16, #tpu.memory_space<vmem>>, vector<16x128xbf16>
    %c0_1 = arith.constant 0 : index
    %c0_2 = arith.constant 0 : index
    %1 = vector.load %arg3[%c0_1, %c0_2] : memref<128x128xbf16, #tpu.memory_space<vmem>>, vector<128x128xbf16>
    %cst = arith.constant dense<0.000000e+00> : vector<16x128xf32>
    %2 = tpu.matmul %0, %1, %cst {dimension_numbers = #tpu.dot_dimension_numbers<[1], [0], [0], [1], [0, 0, 1, 1], [], []>} : vector<16x128xbf16>, vector<128x128xbf16>, vector<16x128xf32> -> vector<16x128xf32>
    %c0_3 = arith.constant 0 : index
    %c0_4 = arith.constant 0 : index
    %3 = vector.load %arg4[%c0_3, %c0_4] : memref<1x128xf32, #tpu.memory_space<vmem>>, vector<1x128xf32>
    %4 = vector.broadcast %3 : vector<1x128xf32> to vector<16x128xf32>
    %5 = arith.addf %2, %4 : vector<16x128xf32>
    %c0_5 = arith.constant 0 : index
    %c0_6 = arith.constant 0 : index
    %6 = vector.load %arg5[%c0_5, %c0_6] : memref<16x128xf32, #tpu.memory_space<vmem>>, vector<16x128xf32>
    tpu.vector_store %arg5[%c0_5, %c0_6], %5 {strides = array<i32>} : memref<16x128xf32, #tpu.memory_space<vmem>>, vector<16x128xf32>,
    return
  }
  func.func @transform_0(%arg0: i32, %arg1: i32) -> (i32, i32) {
    %c0_i32 = arith.constant 0 : i32
    %c0_i32_0 = arith.constant 0 : i32
    return %arg1, %c0_i32 : i32, i32
  }
  func.func @transform_1(%arg0: i32, %arg1: i32) -> (i32, i32) {
    %c0_i32 = arith.constant 0 : i32
    %c0_i32_0 = arith.constant 0 : i32
    return %c0_i32, %arg0 : i32, i32
  }
  func.func @transform_2(%arg0: i32, %arg1: i32) -> (i32, i32) {
    %c0_i32 = arith.constant 0 : i32
    %c0_i32_0 = arith.constant 0 : i32
    return %c0_i32, %arg0 : i32, i32
  }
  func.func @transform_3(%arg0: i32, %arg1: i32) -> (i32, i32) {
    %c0_i32 = arith.constant 0 : i32
    return %arg1, %arg0 : i32, i32
  }
}

</mosaic_0001>

<bundles_post_ra>
// kernel: _lambda_.3
= control target key start
LH: loop header
LB: loop body
LE: loop exit
PB: predicated region body
PF: predicated region fallthrough
CT: control target
= control target key end

     0   :  { %v231_v1 = vmov 0.0   ;;  %vm232_vm0 = vmmov 0   ;;  %s298_s0 = inlined_call_operand.vmem [shape: bf16[16,128], index: 0, kind: input, shape index: {}]   ;;  %s299_s1 = inlined_call_operand.vmem [shape: bf16[128,128], index: 1, kind: input, shape index: {}]   ;;  %s300_s2 = inlined_call_operand.vmem [shape: f32[1,128], index: 2, kind: input, shape index: {}]   ;;  %s301_s3 = inlined_call_operand.hbm [shape: f32[16,128], index: 3, kind: output, shape index: {}]  }
   0x1   :  { %v198_v0 = vld [vmem:[%s299_s1] sm:$0xff]   ;;  %173 = vmatprep.subr.bf16.mxu0 %v231_v1  ;;  %v199_v2 = vld [vmem:[%s299_s1 + $0x8] sm:$0xff]   ;;  %189 = vmatprep.mubr.msk.bf16.mxu0 %vm232_vm0, %v231_v1  ;;  %v200_v3 = vld [vmem:[%s299_s1 + $0x10] sm:$0xff]  }
   0x2   :  { %174 = vmatpush3.bf16.msra.mxu0 %v198_v0 }
   0x3   :  { %175 = vmatprep.subr.bf16.mxu0 %v231_v1 }
   0x6   :  { %176 = vmatpush3.bf16.msra.mxu0 %v199_v2 }
   0x7   :  { %177 = vmatprep.subr.bf16.mxu0 %v231_v1 }
   0x8   :  { %8 = vsyncpa [#allocation3], 0  ;;  %v201_v4 = vld [vmem:[%s299_s1 + $0x18] sm:$0xff]   ;;  %v202_v5 = vld [vmem:[%s299_s1 + $0x20] sm:$0xff]   ;;  %s233_s5 = smov [#allocation2]  }
   0x9   :  { %v203_v6 = vld [vmem:[%s299_s1 + $0x28] sm:$0xff]   ;;  %v204_v7 = vld [vmem:[%s299_s1 + $0x30] sm:$0xff]   ;;  %v205_v8 = vld [vmem:[%s299_s1 + $0x38] sm:$0xff]   ;;  %s143_s6 = sshll.u32 %s233_s5, 4  ;;  %s144_s6 = int_to_ptr.vmem [resolvable:$true] %s143_s6 }
   0xa   :  { %178 = vmatpush3.bf16.msra.mxu0 %v200_v3  ;;  %v206_v9 = vld [vmem:[%s298_s0] sm:$0xff]   ;;  %s207_s1 = scalar_lea.vmem %s144_s6, 256  ;;  %p212_p1 = scmp.lt.s32.totalorder %s144_s6, %s144_s6 }
   0xb   :  { %179 = vmatprep.subr.bf16.mxu0 %v231_v1  ;;  %v154_v10 = vld [vmem:[%s300_s2] ss:$0 sm:$0xff]  ;;  %p208_p0 = scmp.ne.s32.totalorder %s144_s6, %s207_s1  ;;  %p213_p2 = scmp.lt.s32.totalorder %s207_s1, %s207_s1 }
   0xd   :  { %p214_p3 = por %p213_p2, %p212_p1 }
   0xe   :  { %180 = vmatpush3.bf16.msra.mxu0 %v201_v4 }
   0xf   :  { %181 = vmatprep.subr.bf16.mxu0 %v231_v1  ;;  %p215_p4 = pnand %p214_p3, %p208_p0 }
  0x12   :  { %182 = vmatpush3.bf16.msra.mxu0 %v202_v5 }
  0x13   :  { %183 = vmatprep.subr.bf16.mxu0 %v231_v1 }
  0x16   :  { %184 = vmatpush3.bf16.msra.mxu0 %v203_v6 }
  0x17   :  { %185 = vmatprep.subr.bf16.mxu0 %v231_v1 }
  0x1a   :  { %186 = vmatpush3.bf16.msra.mxu0 %v204_v7 }
  0x1b   :  { %187 = vmatprep.subr.bf16.mxu0 %v231_v1 }
  0x1e   :  { %188 = vmatpush3.bf16.msra.mxu0 %v205_v8 }
  0x21   :  { %190 = vmatmul.mubr.bf16.vlgmr.msra.gmra.mrb[0].mxu0 %v206_v9 }
  0xf4   :  { %v129_v11 = vpop.f32.mrb[0].mxu0 }
  0xf5   :  { %v130_v12 = vadd.f32 %v154_v10, %v129_v11  ;;  %v191_v13 = vpop.f32.mrb[1].mxu0 }
  0xf6   :  { %v132_v14 = vpop.f32.mrb[2].mxu0 }
  0xf7   :  { %136 = vst [vmem:[#allocation2] sm:$0xff] %v130_v12  ;;  %v133_v15 = vadd.f32 %v154_v10, %v132_v14  ;;  %v192_v16 = vpop.f32.mrb[3].mxu0 }
  0xf9   :  { %137 = vst [vmem:[#allocation2 + $0x8] sm:$0xff] %v133_v15 }
  0xfa   :  { %218 = shalt.err (!%p215_p4)
}
  0xfb   :  { %s219_s7 = scalar_lea.hbm %s301_s3, 256 }
  0xfc   :  { %p220_p5 = scmp.ne.s32.totalorder %s301_s3, %s219_s7  ;;  %p223_p6 = scmp.lt.u32.totalorder %s219_s7, %s301_s3 }
  0xfe   :  { %p225_p7 = pnand %p223_p6, %p220_p5 }
 0x100   :  { %228 = shalt.err (!%p225_p7)
}
 0x101   :  { %s234_s12 = smov 128   ;;  %s235_s13 = smov 8  }
 0x102   :  { %149 = dma.vmem_to_hbm [thread:$0]  %s144_s6, 256, %s301_s3, [#allocation3], %s234_s12, %s234_s12, %s235_s13  }
 0x103   :  { %229 = dma.done.wait [#allocation3], 256  }
 0x104   :  { %230 = vsyncadd [#allocation3], 4294967040 }
 0x105   :  { %153 = vsyncpa [#allocation3], 1 }

// kernel: _lambda_.2
= control target key start
LH: loop header
LB: loop body
LE: loop exit
PB: predicated region body
PF: predicated region fallthrough
CT: control target
= control target key end

     0   :  { %s4163_s25 = smov 0   ;;  %s4165_s26 = smov 0   ;;  %s4764_s0 = inlined_call_operand.vmem [shape: f32[2,8,128], index: 0, kind: input, shape index: {}]   ;;  %s4765_s1 = inlined_call_operand.vmem [shape: bf16[2,128,384], index: 1, kind: input, shape index: {}]   ;;  %s4766_s2 = inlined_call_operand.vmem [shape: f32[2,1,384], index: 2, kind: input, shape index: {}]   ;;  %s4767_s3 = inlined_call_operand.vmem [shape: bf16[2,128,128], index: 3, kind: input, shape index: {}]   ;;  %s4768_s4 = inlined_call_operand.vmem [shape: f32[2,1,128], index: 4, kind: input, shape index: {}, may-alias: {4,6,8,10,12}]   ;;  %s4769_s5 = inlined_call_operand.vmem [shape: bf16[2,128,128], index: 5, kind: input, shape index: {}]   ;;  %s4770_s6 = inlined_call_operand.vmem [shape: f32[2,1,128], index: 6, kind: input, shape index: {}, may-alias: {4,6,8,10,12}]   ;;  %s4771_s7 = inlined_call_operand.vmem [shape: bf16[2,128,128], index: 7, kind: input, shape index: {}]   ;;  %s4772_s8 = inlined_call_operand.vmem [shape: f32[2,1,128], index: 8, kind: input, shape index: {}, may-alias: {4,6,8,10,12}]   ;;  %s4773_s9 = inlined_call_operand.vmem [shape: f32[2,1,128], index: 9, kind: input, shape index: {}, may-alias: {9,11}]   ;;  %s4774_s10 = inlined_call_operand.vmem [shape: f32[2,1,128], index: 10, kind: input, shape index: {}, may-alias: {4,6,8,10,12}]   ;;  %s4775_s11 = inlined_call_operand.vmem [shape: f32[2,1,128], index: 11, kind: input, shape index: {}, may-alias: {9,11}]   ;;  %s4776_s12 = inlined_call_operand.vmem [shape: f32[2,1,128], index: 12, kind: input, shape index: {}, may-alias: {4,6,8,10,12}]   ;;  %s4777_s13 = inlined_call_operand.vmem [shape: bf16[2,8,128], index: 13, kind: output, shape index: {}]  }
   0x1   :  { %4781 = sst [smem:[#allocation6_spill]] %s4764_s0  ;;  %s4167_s27 = smov 0  }
   0x2   :  { %4782 = sst [smem:[#allocation7_spill]] %s4765_s1 }
   0x3   :  { %4783 = sst [smem:[#allocation8_spill]] %s4766_s2 }
   0x4   :  { %4784 = sst [smem:[#allocation9_spill]] %s4767_s3 }
   0x5   :  { %4785 = sst [smem:[#allocation10_spill]] %s4769_s5 }
   0x6   :  { %4786 = sst [smem:[#allocation11_spill]] %s4777_s13 }
   0x7 LB: > { %4787 = sst [smem:[#allocation3_spill]] %s4079_s26  ;;  %s32_s28 = sadd.s32 1, %s4079_s26  ;;  %s4083_s27 = sphi %s4167_s27, %s23_s27   ;;  %s4079_s26 = sphi %s4165_s26, %s4802_s26   ;;  %s4075_s25 = sphi %s4163_s25, %s4801_s25  }
   0x8   : > { %4788 = sst [smem:[#allocation4_spill]] %s4083_s27  ;;  %p3579_p0 = scmp.ge.s32.totalorder %s4083_s27, 1 }
   0x9   : > { %p33_p1 = scmp.ge.s32.totalorder %s32_s28, 2  ;;  %p505_p2 = scmp.lt.s32.totalorder %s4083_s27, 3 }
   0xb   : > { %s4804_s28 = smov (%p33_p1, %s32_s28), 0  ;;  %p506_p3 = pnand %p3579_p0, %p505_p2 }
   0xc   : > { %4789 = sst [smem:[#allocation5_spill]] %s4804_s28  ;;  %p600_p4 = scmp.lt.s32.totalorder (!%p506_p3), %s4075_s25, 1 }
   0xd   : > { %509 = sbr.rel (%p506_p3) target bundleno = 2698 (0xa8a), region = 72  ;;  %s4790_s3 = sld [smem:[#allocation9_spill]] (!%p506_p3) }
   0xe   : > { %s4791_s1 = sld [smem:[#allocation7_spill]] (!%p506_p3)  ;;  %s4792_s2 = sld [smem:[#allocation8_spill]] (!%p506_p3) }
   0xf   : > { %s4793_s5 = sld [smem:[#allocation10_spill]] (!%p506_p3)  ;;  %p3587_p5 = scmp.ne.s32.totalorder (!%p506_p3), %s4075_s25, 0 }
  0x14   : > { %s4185_s29 = scalar_select %p600_p4, %s4075_s25, 1 }
  0x15   : > { %s4794_s23 = sld [smem:[#allocation6_spill]] (!%p3587_p5) }
  0x16   : > { %s3929_s30 = smul.u32 192, %s4185_s29  ;;  %s3677_s14 = sshll.u32 %s4185_s29, 6 }
  0x17   : > { %s3930_s15 = smul.u32 3, %s4185_s29  ;;  %s4193_s18 = scalar_lea.vmem %s4790_s3, %s3677_s14 }
  0x18   : > { %s4198_s21 = scalar_lea.vmem %s4791_s1, %s3929_s30  ;;  %s4212_s16 = scalar_lea.vmem %s4793_s5, %s3677_s14 }
  0x19   : > { %s4207_s27 = scalar_lea.vmem %s4792_s2, %s3930_s15  ;;  %s4221_s1 = scalar_lea.vmem %s4771_s7, %s3677_s14 }
  0x1a   : > { %s632_s26 = scalar_lea.vmem %s4772_s8, %s4185_s29  ;;  %s635_s24 = scalar_lea.vmem %s4773_s9, %s4185_s29 }
  0x1b   : > { %s638_s2 = scalar_lea.vmem %s4774_s10, %s4185_s29  ;;  %s641_s17 = scalar_lea.vmem %s4775_s11, %s4185_s29  ;;  %v656_v0 = vld [vmem:[%s4794_s23] sm:$0xff] (!%p3587_p5)  ;;  %v657_v1 = vld [vmem:[%s4794_s23 + $0x8] sm:$0xff] (!%p3587_p5) }
  0x1c   : > { %s644_s14 = scalar_lea.vmem %s4776_s12, %s4185_s29  ;;  %655 = sbr.rel (%p3587_p5) target bundleno = 35 (0x23), region = 76  ;;  %658 = vst [vmem:[#allocation2] sm:$0xff] (!%p3587_p5), %v656_v0  ;;  %659 = vst [vmem:[#allocation2 + $0x8] sm:$0xff] (!%p3587_p5), %v657_v1 }
  0x23 PF: > { %v3963_v2 = vld [vmem:[%s4198_s21 + $0x4] ss:$12 sps:$4 sm:$0xff]   ;;  %v3965_v3 = vld [vmem:[%s4198_s21] ss:$12 sps:$4 sm:$0xff]   ;;  %v4085_v4 = vmov 0   ;;  %v4086_v23 = vmov 0.0   ;;  %v697_v26 = vlaneseq  ;;  %s4797_s0 = scalar_lea.vmem %s4768_s4, %s4185_s29  ;;  %s4798_s22 = scalar_lea.vmem %s4770_s6, %s4185_s29 }
  0x24   : > { %872 = vmatprep.mubr.bf16.mxu0 %v4085_v4  ;;  %840 = vmatprep.subr.bf16.mxu0 %v3963_v2  ;;  %v3966_v5 = vld [vmem:[%s4198_s21 + $0x1c] ss:$12 sps:$4 sm:$0xff]   ;;  %v3968_v6 = vld [vmem:[%s4198_s21 + $0x18] ss:$12 sps:$4 sm:$0xff]   ;;  %v3969_v7 = vld [vmem:[%s4198_s21 + $0x34] ss:$12 sps:$4 sm:$0xff]   ;;  %v4309_v53 = vpack.i.b16 %v4085_v4, %v4085_v4 }
  0x25   : > { %841 = vmatpush1.bf16.msra.mxu0 %v3965_v3  ;;  %v3971_v8 = vld [vmem:[%s4198_s21 + $0x30] ss:$12 sps:$4 sm:$0xff]   ;;  %v3972_v9 = vld [vmem:[%s4198_s21 + $0x4c] ss:$12 sps:$4 sm:$0xff]   ;;  %v3974_v10 = vld [vmem:[%s4198_s21 + $0x48] ss:$12 sps:$4 sm:$0xff]   ;;  %3753 = vmatprep.subr.bf16.mxu1 %v4086_v23 }
  0x26   : > { %842 = vmatprep.subr.bf16.mxu0 %v3966_v5  ;;  %v3975_v11 = vld [vmem:[%s4198_s21 + $0x64] ss:$12 sps:$4 sm:$0xff]   ;;  %v3977_v12 = vld [vmem:[%s4198_s21 + $0x60] ss:$12 sps:$4 sm:$0xff]   ;;  %v3978_v13 = vld [vmem:[%s4198_s21 + $0x7c] ss:$12 sps:$4 sm:$0xff]  }
  0x27   : > { %v3980_v14 = vld [vmem:[%s4198_s21 + $0x78] ss:$12 sps:$4 sm:$0xff]   ;;  %v3981_v15 = vld [vmem:[%s4198_s21 + $0x94] ss:$12 sps:$4 sm:$0xff]   ;;  %v3983_v16 = vld [vmem:[%s4198_s21 + $0x90] ss:$12 sps:$4 sm:$0xff]  }
  0x28   : > { %v3984_v17 = vld [vmem:[%s4198_s21 + $0xac] ss:$12 sps:$4 sm:$0xff]   ;;  %v3986_v18 = vld [vmem:[%s4198_s21 + $0xa8] ss:$12 sps:$4 sm:$0xff]   ;;  %v660_v19 = vld [vmem:[#allocation2] sm:$0xff]  ;;  %v4276_v27 = vshrl.u32 %v697_v26, 7 }
  0x29   : > { %843 = vmatpush1.bf16.msra.mxu0 %v3968_v6  ;;  %v661_v20 = vld [vmem:[#allocation2 + $0x8] sm:$0xff]  ;;  %v3989_v25 = vld [vmem:[%s4198_s21 + $0x38] ss:$12 sps:$4 sm:$0xff]   ;;  %v3990_v28 = vld [vmem:[%s4198_s21 + $0x50] ss:$12 sps:$4 sm:$0xff]   ;;  %s4087_s5 = smov 32  }
  0x2a   : > { %844 = vmatprep.subr.bf16.mxu0 %v3969_v7  ;;  %v662_v21 = vpack.c.bf16 %v661_v20, %v660_v19  ;;  %v3987_v22 = vld [vmem:[%s4198_s21 + $0x8] ss:$12 sps:$4 sm:$0xff]   ;;  %v3988_v24 = vld [vmem:[%s4198_s21 + $0x20] ss:$12 sps:$4 sm:$0xff]   ;;  %v699_v29 = vsub.s32 0, %v4276_v27  ;;  %v703_v31 = vsub.s32 1, %v4276_v27 }
  0x2b   : > { %3754 = vmatpush3.bf16.msra.mxu1 %v3987_v22  ;;  %v4281_v30 = vld [vmem:[%s4207_s27] sm:$0x7]  ;;  %v3991_v40 = vld [vmem:[%s4198_s21 + $0x68] ss:$12 sps:$4 sm:$0xff]   ;;  %s4088_s27 = smov 96   ;;  %s4089_s19 = smov 64  }
  0x2c   : > { %3755 = vmatprep.subr.bf16.mxu1 %v4086_v23  ;;  %v700_v32 = vrot.slane %v4281_v30, %v699_v29  ;;  %v704_v34 = vrot.slane %v4281_v30, %v703_v31  ;;  %v3992_v45 = vld [vmem:[%s4198_s21 + $0x80] ss:$12 sps:$4 sm:$0xff]   ;;  %v3993_v46 = vld [vmem:[%s4198_s21 + $0x98] ss:$12 sps:$4 sm:$0xff]   ;;  %v3994_v47 = vld [vmem:[%s4198_s21 + $0xb0] ss:$12 sps:$4 sm:$0xff]  }
  0x2d   : > { %845 = vmatpush1.bf16.msra.mxu0 %v3971_v8  ;;  %vm4090_vm0 = vmmov 0   ;;  %v4091_v48 = vmov 1983009808   ;;  %v4092_v50 = vmov 1934713408   ;;  %vm1770_vm1 = vcmask 261120  }
  0x2e   : > { %846 = vmatprep.subr.bf16.mxu0 %v3972_v9  ;;  %3769 = vmatprep.mubr.msk.bf16.mxu1 %vm4090_vm0, %v4086_v23  ;;  %v956_v49 = vunpack.c.l.s4 %v4091_v48  ;;  %v987_v51 = vunpack.c.l.s4 %v4092_v50  ;;  %vm2154_vm3 = vcmask 64512   ;;  %vm2254_vm4 = vcmask 1043456   ;;  %p3671_p6 = scmp.ge.s32.totalorder %s4075_s25, 1 }
  0x2f   : > { %3756 = vmatpush3.bf16.msra.mxu1 %v3988_v24  ;;  %vm2941_vm5 = vcmask 523264   ;;  %vm2944_vm6 = vcmask 785408  }
  0x30   : > { %3757 = vmatprep.subr.bf16.mxu1 %v4086_v23  ;;  %v957_v52 = vunpack.c.0.s8 %v956_v49  ;;  %v988_v54 = vunpack.c.0.s8 %v987_v51 }
  0x31   : > { %847 = vmatpush1.bf16.msra.mxu0 %v3974_v10 }
  0x32   : > { %848 = vmatprep.subr.bf16.mxu0 %v3975_v11  ;;  %v4312_v57 = vsub.s32 %v957_v52, %v4276_v27  ;;  %v4316_v63 = vsub.s32 %v988_v54, %v4276_v27 }
  0x33   : > { %3758 = vmatpush3.bf16.msra.mxu1 %v3989_v25 }
  0x34   : > { %3759 = vmatprep.subr.bf16.mxu1 %v4086_v23 }
  0x35   : > { %849 = vmatpush1.bf16.msra.mxu0 %v3977_v12 }
  0x36   : > { %850 = vmatprep.subr.bf16.mxu0 %v3978_v13 }
  0x37   : > { %3760 = vmatpush3.bf16.msra.mxu1 %v3990_v28 }
  0x38   : > { %3761 = vmatprep.subr.bf16.mxu1 %v4086_v23 }
  0x39   : > { %851 = vmatpush1.bf16.msra.mxu0 %v3980_v14 }
  0x3a   : > { %852 = vmatprep.subr.bf16.mxu0 %v3981_v15 }
  0x3b   : > { %3762 = vmatpush3.bf16.msra.mxu1 %v3991_v40 }
  0x3c   : > { %3763 = vmatprep.subr.bf16.mxu1 %v4086_v23 }
  0x3d   : > { %853 = vmatpush1.bf16.msra.mxu0 %v3983_v16 }
  0x3e   : > { %854 = vmatprep.subr.bf16.mxu0 %v3984_v17 }
  0x3f   : > { %3764 = vmatpush3.bf16.msra.mxu1 %v3992_v45 }
  0x40   : > { %3765 = vmatprep.subr.bf16.mxu1 %v4086_v23 }
  0x41   : > { %855 = vmatpush1.bf16.msra.mxu0 %v3986_v18 }
  0x42   : > { %3797 = vmatprep.subr.bf16.mxu0 %v4086_v23 }
  0x43   : > { %3766 = vmatpush3.bf16.msra.mxu1 %v3993_v46 }
  0x44   : > { %873 = vmatmul.mubr.bf16.vlgmr.msra.gmra.mrb[0].mxu0 %v662_v21  ;;  %3767 = vmatprep.subr.bf16.mxu1 %v4086_v23 }
  0x45   : > { %3799 = vmatprep.mubr.msk.bf16.mxu0 %vm4090_vm0, %v4086_v23 }
  0x47   : > { %3768 = vmatpush3.bf16.msra.mxu1 %v3994_v47 }
  0x48   : > { %3773 = vmatprep.subr.bf16.mxu1 %v4086_v23 }
  0x4a   : > { %3770 = vmatmul.mubr.bf16.vlgmr.msra.gmra.mrb[0].mxu1 %v662_v21 }
  0x4b   : > { %3775 = vmatprep.mubr.msk.bf16.mxu1 %vm4090_vm0, %v4086_v23 }
 0x117   : > { %v874_v33 = vpop.f32.mrb[0].mxu0 }
 0x118   : > { %v876_v35 = vpop.f32.mrb[1].mxu0  ;;  %v875_v37 = vadd.f32 %v874_v33, %v700_v32 }
 0x119   : > { %v878_v36 = vpop.f32.mrb[2].mxu0  ;;  %v877_v41 = vadd.f32 %v876_v35, %v704_v34 }
 0x11a   : > { %v879_v38 = vadd.f32 %v878_v36, %v700_v32  ;;  %v880_v39 = vpop.f32.mrb[3].mxu0 }
 0x11b   : > { %v881_v42 = vadd.f32 %v880_v39, %v704_v34 }
 0x11c   : > { %v924_v43 = vpack.c.bf16 %v879_v38, %v875_v37 }
 0x11d   : > { %v1210_v44 = vpack.c.bf16 %v881_v42, %v877_v41 }
 0x11e   : > { %v936_v2 = vshrl.u32 %v924_v43, 16 }
 0x11f   : > { %1216 = vrot.lane.b32.xlu1 %v1210_v44, %s4087_s5  ;;  %1212 = vrot.lane.b32.xlu0 %v1210_v44, %s4088_s27  ;;  %v1222_v59 = vshrl.u32 %v1210_v44, 16 }
 0x123   : > { %1214 = vrot.lane.b32.xlu0 %v1210_v44, %s4089_s19  ;;  %926 = vrot.lane.b32.xlu1 %v924_v43, %s4088_s27 }
 0x127   : > { %928 = vrot.lane.b32.xlu0 %v924_v43, %s4089_s19  ;;  %930 = vrot.lane.b32.xlu1 %v924_v43, %s4087_s5 }
 0x191   : > { %v1217_v55 = vpop.permute.xlu1 %1216  ;;  %v1213_v56 = vpop.permute.xlu0 %1212 }
 0x192   : > { %v1220_v58 = vpack.i.b16 %v1213_v56, %v1210_v44  ;;  %v1223_v60 = vshrl.u32 %v1213_v56, 16  ;;  %v1231_v3 = vshrl.u32 %v1217_v55, 16 }
 0x194   : > { %v1224_v61 = vpack.i.b16 %v1223_v60, %v1222_v59  ;;  %v1234_v62 = vcombine.high %v1220_v58, %v4309_v53  ;;  %v1241_v5 = vrot.slane %v1220_v58, %v4312_v57 }
 0x195   : > { %v1215_v0 = vpop.permute.xlu0 %1214  ;;  %v927_v1 = vpop.permute.xlu1 %926 }
 0x196   : > { %v1300_v6 = vcombine.high %v1224_v61, %v4309_v53  ;;  %v1228_v7 = vpack.i.b16 %v1217_v55, %v1215_v0  ;;  %v1248_v8 = vrot.slane %v1234_v62, %v4312_v57  ;;  %v1230_v9 = vshrl.u32 %v1215_v0, 16 }
 0x197   : > { %v934_v10 = vpack.i.b16 %v927_v1, %v924_v43  ;;  %v937_v11 = vshrl.u32 %v927_v1, 16  ;;  %v1307_v12 = vrot.slane %v1224_v61, %v4312_v57 }
 0x198   : > { %v1314_v13 = vrot.slane %v1300_v6, %v4312_v57  ;;  %v1249_v14 = vcombine.high %v1228_v7, %v4309_v53  ;;  %v1256_v15 = vrot.slane %v1228_v7, %v4312_v57  ;;  %v1232_v16 = vpack.i.b16 %v1231_v3, %v1230_v9 }
 0x199   : > { %v938_v17 = vpack.i.b16 %v937_v11, %v936_v2  ;;  %v954_v18 = vcombine.high %v934_v10, %v4309_v53  ;;  %v961_v19 = vrot.slane %v934_v10, %v4312_v57  ;;  %v929_v20 = vpop.permute.xlu0 %928  ;;  %v931_v49 = vpop.permute.xlu1 %930 }
 0x19a   : > { %v1263_v21 = vrot.slane %v1249_v14, %v4312_v57  ;;  %v1264_v22 = vcombine.low %v1241_v5, %v1256_v15  ;;  %v1265_v24 = vcombine.high %v1241_v5, %v1256_v15  ;;  %v944_v25 = vshrl.u32 %v929_v20, 16 }
 0x19b   : > { %v1315_v28 = vcombine.high %v1232_v16, %v4309_v53  ;;  %v1322_v29 = vrot.slane %v1232_v16, %v4312_v57  ;;  %v968_v31 = vrot.slane %v954_v18, %v4312_v57  ;;  %v1020_v32 = vcombine.high %v938_v17, %v4309_v53 }
 0x19c   : > { %v1272_v33 = vrot.slane %v1264_v22, %v4316_v63  ;;  %v1279_v34 = vrot.slane %v1265_v24, %v4316_v63  ;;  %v1280_v35 = vcombine.low %v1248_v8, %v1263_v21  ;;  %v1281_v36 = vcombine.high %v1248_v8, %v1263_v21 }
 0x19d   : > { %v1329_v37 = vrot.slane %v1315_v28, %v4312_v57  ;;  %v1330_v38 = vcombine.low %v1307_v12, %v1322_v29  ;;  %v1331_v39 = vcombine.high %v1307_v12, %v1322_v29  ;;  %v4336_v40 = vrot.slane %v938_v17, %v4312_v57 }
 0x19e   : > { %v1288_v41 = vrot.slane %v1280_v35, %v4316_v63  ;;  %v1295_v42 = vrot.slane %v1281_v36, %v4316_v63  ;;  %v1366_v43 = vcombine.low %v1272_v33, %v1279_v34  ;;  %v3616_v44 = vcombine.high %v1272_v33, %v1279_v34 }
 0x19f   : > { %v1338_v45 = vrot.slane %v1330_v38, %v4316_v63  ;;  %v1345_v46 = vrot.slane %v1331_v39, %v4316_v63  ;;  %v1346_v47 = vcombine.low %v1314_v13, %v1329_v37  ;;  %v1347_v48 = vcombine.high %v1314_v13, %v1329_v37 }
 0x1a0   : > { %v1373_v50 = vrot.slane %v1366_v43, %v4312_v57  ;;  %v1381_v51 = vrot.slane %v3616_v44, %v4312_v57  ;;  %v1416_v52 = vcombine.low %v1288_v41, %v1295_v42  ;;  %v3618_v54 = vcombine.high %v1288_v41, %v1295_v42 }
 0x1a1   : > { %v1354_v55 = vrot.slane %v1346_v47, %v4316_v63  ;;  %v1361_v56 = vrot.slane %v1347_v48, %v4316_v63  ;;  %v1391_v58 = vcombine.low %v1338_v45, %v1345_v46  ;;  %v3617_v59 = vcombine.high %v1338_v45, %v1345_v46 }
 0x1a2   : > { %v1423_v60 = vrot.slane %v1416_v52, %v4312_v57  ;;  %v1431_v61 = vrot.slane %v3618_v54, %v4312_v57  ;;  %v1034_v62 = vrot.slane %v1020_v32, %v4312_v57  ;;  %v942_v0 = vpack.i.b16 %v931_v49, %v929_v20 }
 0x1a3   : > { %v1398_v1 = vrot.slane %v1391_v58, %v4312_v57  ;;  %v1406_v2 = vrot.slane %v3617_v59, %v4312_v57  ;;  %v1441_v3 = vcombine.low %v1354_v55, %v1361_v56  ;;  %v3619_v5 = vcombine.high %v1354_v55, %v1361_v56 }
 0x1a4   : > { %v945_v6 = vshrl.u32 %v931_v49, 16  ;;  %v969_v7 = vcombine.high %v942_v0, %v4309_v53  ;;  %v976_v8 = vrot.slane %v942_v0, %v4312_v57  ;;  %v1382_v9 = vcombine.low %v1373_v50, %v1381_v51 }
 0x1a5   : > { %v1407_v10 = vcombine.low %v1398_v1, %v1406_v2  ;;  %v1432_v11 = vcombine.low %v1423_v60, %v1431_v61  ;;  %v1448_v12 = vrot.slane %v1441_v3, %v4312_v57  ;;  %v1456_v13 = vrot.slane %v3619_v5, %v4312_v57 }
 0x1a6   : > { %v946_v14 = vpack.i.b16 %v945_v6, %v944_v25  ;;  %v983_v15 = vrot.slane %v969_v7, %v4312_v57  ;;  %v984_v16 = vcombine.low %v961_v19, %v976_v8  ;;  %v985_v17 = vcombine.high %v961_v19, %v976_v8 }
 0x1a7   : > { %v4357_v18 = vrot.slane %v1382_v9, %v4316_v63  ;;  %v4360_v20 = vrot.slane %v1407_v10, %v4316_v63  ;;  %v4363_v21 = vrot.slane %v1432_v11, %v4316_v63  ;;  %v1457_v22 = vcombine.low %v1448_v12, %v1456_v13 }
 0x1a8   : > { %v992_v24 = vrot.slane %v984_v16, %v4316_v63  ;;  %v999_v28 = vrot.slane %v985_v17, %v4316_v63  ;;  %v1000_v29 = vcombine.low %v968_v31, %v983_v15  ;;  %v1001_v25 = vcombine.high %v968_v31, %v983_v15 }
 0x1a9   : > { %v1035_v32 = vcombine.high %v946_v14, %v4309_v53  ;;  %v1042_v19 = vrot.slane %v946_v14, %v4312_v57  ;;  %v1468_v33 = vpack.i.b16 %v4360_v20, %v4357_v18  ;;  %v4372_v34 = vrot.slane %v1457_v22, %v4316_v63 }
 0x1aa   : > { %v1008_v35 = vrot.slane %v1000_v29, %v4316_v63  ;;  %v1015_v36 = vrot.slane %v1001_v25, %v4316_v63  ;;  %v1086_v37 = vcombine.low %v992_v24, %v999_v28  ;;  %v3612_v38 = vcombine.high %v992_v24, %v999_v28 }
 0x1ab   : > { %v1049_v39 = vrot.slane %v1035_v32, %v4312_v57  ;;  %v1050_v31 = vcombine.low %v4336_v40, %v1042_v19  ;;  %v1051_v41 = vcombine.high %v4336_v40, %v1042_v19  ;;  %v1775_v42 = vsel %vm1770_vm1, %v1468_v33, 0 }
 0x1ac   : > { %v1093_v43 = vrot.slane %v1086_v37, %v4312_v57  ;;  %v1101_v44 = vrot.slane %v3612_v38, %v4312_v57  ;;  %v1136_v45 = vcombine.low %v1008_v35, %v1015_v36  ;;  %v3614_v46 = vcombine.high %v1008_v35, %v1015_v36  ;;  %3774 = vmatpush3.bf16.xpose.msra.mxu1 %v1775_v42 }
 0x1ad   : > { %v1058_v47 = vrot.slane %v1050_v31, %v4316_v63  ;;  %v1065_v48 = vrot.slane %v1051_v41, %v4316_v63  ;;  %v1066_v49 = vcombine.low %v1034_v62, %v1049_v39  ;;  %v1067_v50 = vcombine.high %v1034_v62, %v1049_v39  ;;  %3779 = vmatprep.subr.bf16.mxu1 %v4086_v23 }
 0x1ae   : > { %v1143_v51 = vrot.slane %v1136_v45, %v4312_v57  ;;  %v1151_v40 = vrot.slane %v3614_v46, %v4312_v57  ;;  %v1480_v52 = vpack.i.b16 %v4372_v34, %v4363_v21  ;;  %v1102_v59 = vcombine.low %v1093_v43, %v1101_v44 }
 0x1af   : > { %v1074_v54 = vrot.slane %v1066_v49, %v4316_v63  ;;  %v1081_v55 = vrot.slane %v1067_v50, %v4316_v63  ;;  %v1111_v56 = vcombine.low %v1058_v47, %v1065_v48  ;;  %v3613_v58 = vcombine.high %v1058_v47, %v1065_v48 }
 0x1b0   : > { %v1959_v60 = vsel %vm1770_vm1, %v1480_v52, 0  ;;  %v1152_v2 = vcombine.low %v1143_v51, %v1151_v40  ;;  %v1469_v3 = vshrl.u32 %v4357_v18, 16  ;;  %v1470_v5 = vshrl.u32 %v4360_v20, 16 }
 0x1b1   : > { %v1118_v61 = vrot.slane %v1111_v56, %v4312_v57  ;;  %v1126_v62 = vrot.slane %v3613_v58, %v4312_v57  ;;  %v1161_v0 = vcombine.low %v1074_v54, %v1081_v55  ;;  %v3615_v1 = vcombine.high %v1074_v54, %v1081_v55  ;;  %3798 = vmatpush3.bf16.xpose.msra.mxu0 %v1959_v60 }
 0x1b2   : > { %3809 = vmatprep.subr.bf16.mxu0 %v4086_v23  ;;  %v4401_v9 = vcombine.high %v4372_v34, %v4085_v4  ;;  %v1109_v10 = vrot.slane %v1102_v59, %v4316_v63  ;;  %v1471_v13 = vpack.i.b16 %v1470_v5, %v1469_v3  ;;  %v1440_v14 = vcombine.high %v4363_v21, %v4085_v4 }
 0x1b3   : > { %v1127_v6 = vcombine.low %v1118_v61, %v1126_v62  ;;  %v1168_v7 = vrot.slane %v1161_v0, %v4312_v57  ;;  %v1176_v8 = vrot.slane %v3615_v1, %v4312_v57  ;;  %v1159_v16 = vrot.slane %v1152_v2, %v4316_v63  ;;  %v917_v1 = vpop.f32.mrb[0].mxu1 }
 0x1b4   : > { %v1486_v22 = vpack.i.b16 %v4401_v9, %v1440_v14  ;;  %v1821_v24 = vsel %vm1770_vm1, %v1471_v13, 0  ;;  %v1415_v29 = vcombine.high %v4360_v20, %v4085_v4  ;;  %v1390_v19 = vcombine.high %v4357_v18, %v4085_v4  ;;  %v3771_v3 = vpop.f32.mrb[1].mxu1 }
 0x1b5   : > { %v1177_v11 = vcombine.low %v1168_v7, %v1176_v8  ;;  %v1134_v12 = vrot.slane %v1127_v6, %v4316_v63  ;;  %v1189_v33 = vshrl.u32 %v1109_v10, 16  ;;  %v1160_v37 = vcombine.high %v1159_v16, %v4085_v4  ;;  %v920_v5 = vpop.f32.mrb[2].mxu1 }
 0x1b6   : > { %v2051_v25 = vsel %vm1770_vm1, %v1486_v22, 0  ;;  %v1474_v20 = vpack.i.b16 %v1415_v29, %v1390_v19  ;;  %v1476_v31 = vshrl.u32 %v1415_v29, 16  ;;  %v1475_v41 = vshrl.u32 %v1390_v19, 16  ;;  %v3772_v7 = vpop.f32.mrb[3].mxu1 }
 0x1b7   : > { %v1188_v15 = vpack.i.b16 %v1134_v12, %v1109_v10  ;;  %v1184_v17 = vrot.slane %v1177_v11, %v4316_v63  ;;  %v1190_v32 = vshrl.u32 %v1134_v12, 16  ;;  %v1135_v18 = vcombine.high %v1134_v12, %v4085_v4 }
 0x1b8   : > { %v1867_v38 = vsel %vm1770_vm1, %v1474_v20, 0  ;;  %v1110_v42 = vcombine.high %v1109_v10, %v4085_v4  ;;  %v1477_v43 = vpack.i.b16 %v1476_v31, %v1475_v41  ;;  %v1482_v46 = vshrl.u32 %v4372_v34, 16 }
 0x1b9   : > { %3776 = vmatmul.mubr.msk.bf16.vlgmr.msra.gmra.mrb[4].mxu1 %vm1770_vm1, %v1188_v15  ;;  %v1200_v28 = vpack.i.b16 %v1184_v17, %v1159_v16  ;;  %v1185_v35 = vcombine.high %v1184_v17, %v4085_v4  ;;  %v1191_v36 = vpack.i.b16 %v1190_v32, %v1189_v33  ;;  %v1196_v47 = vshrl.u32 %v1135_v18, 16 }
 0x1ba   : > { %3780 = vmatpush3.bf16.xpose.msra.mxu1 %v1821_v24  ;;  %3781 = vmatprep.mubr.msk.bf16.mxu1 %vm4090_vm0, %v4086_v23  ;;  %v1194_v44 = vpack.i.b16 %v1135_v18, %v1110_v42  ;;  %v1913_v45 = vsel %vm1770_vm1, %v1477_v43, 0  ;;  %v1481_v48 = vshrl.u32 %v4363_v21, 16  ;;  %v1195_v49 = vshrl.u32 %v1110_v42, 16 }
 0x1bb   : > { %3800 = vmatmul.mubr.msk.bf16.vlgmr.msra.gmra.mrb[4].mxu0 %vm1770_vm1, %v1200_v28  ;;  %3785 = vmatprep.subr.bf16.mxu1 %v4086_v23  ;;  %v1206_v39 = vpack.i.b16 %v1185_v35, %v1160_v37  ;;  %v1488_v52 = vshrl.u32 %v4401_v9, 16  ;;  %v1202_v34 = vshrl.u32 %v1184_v17, 16  ;;  %v1487_v54 = vshrl.u32 %v1440_v14, 16 }
 0x1bc   : > { %3810 = vmatpush3.bf16.xpose.msra.mxu0 %v2051_v25  ;;  %3811 = vmatprep.mubr.msk.bf16.mxu0 %vm4090_vm0, %v4086_v23  ;;  %v1483_v50 = vpack.i.b16 %v1482_v46, %v1481_v48  ;;  %v1197_v51 = vpack.i.b16 %v1196_v47, %v1195_v49  ;;  %v1201_v55 = vshrl.u32 %v1159_v16, 16  ;;  %v1208_v59 = vshrl.u32 %v1185_v35, 16 }
 0x1bd   : > { %3821 = vmatprep.subr.bf16.mxu0 %v4086_v23  ;;  %v1489_v56 = vpack.i.b16 %v1488_v52, %v1487_v54  ;;  %v1207_v60 = vshrl.u32 %v1160_v37, 16  ;;  %v707_v62 = vsub.s32 2, %v4276_v27  ;;  %v2142_v9 = vand.u32 127, %v697_v26 }
 0x1be   : > { %v2005_v40 = vsel %vm1770_vm1, %v1483_v50, 0  ;;  %v1203_v21 = vpack.i.b16 %v1202_v34, %v1201_v55 }
 0x1bf   : > { %v2097_v58 = vsel %vm1770_vm1, %v1489_v56, 0  ;;  %v1209_v61 = vpack.i.b16 %v1208_v59, %v1207_v60  ;;  %v708_v0 = vrot.slane %v4281_v30, %v707_v62  ;;  %vm4463_vm2 = vcmp.ge.s32.totalorder %v4276_v27, %v2142_v9 }
 0x1c1   : > { %3782 = vmatmul.mubr.msk.bf16.vlgmr.msra.gmra.mrb[8].mxu1 %vm1770_vm1, %v1191_v36  ;;  %v918_v2 = vadd.f32 %v917_v1, %v708_v0  ;;  %v921_v6 = vadd.f32 %v920_v5, %v708_v0 }
 0x1c2   : > { %3786 = vmatpush3.bf16.xpose.msra.mxu1 %v1867_v38  ;;  %3787 = vmatprep.mubr.msk.bf16.mxu1 %vm4090_vm0, %v4086_v23 }
 0x1c3   : > { %3812 = vmatmul.mubr.msk.bf16.vlgmr.msra.gmra.mrb[8].mxu0 %vm1770_vm1, %v1206_v39  ;;  %3791 = vmatprep.subr.bf16.mxu1 %v4086_v23  ;;  %v4459_v8 = vpack.c.bf16 %v921_v6, %v918_v2 }
 0x1c4   : > { %3823 = vmatprep.mubr.msk.bf16.mxu0 %vm4090_vm0, %v4086_v23 }
 0x1c9   : > { %3788 = vmatmul.mubr.msk.bf16.vlgmr.msra.gmra.mrb[12].mxu1 %vm1770_vm1, %v1194_v44 }
 0x1ca   : > { %3792 = vmatpush3.bf16.xpose.msra.mxu1 %v1913_v45  ;;  %3793 = vmatprep.mubr.msk.bf16.mxu1 %vm4090_vm0, %v4086_v23 }
 0x1cb   : > { %3803 = vmatprep.subr.bf16.mxu1 %v4086_v23 }
 0x1d1   : > { %3794 = vmatmul.mubr.msk.bf16.vlgmr.msra.gmra.mrb[16].mxu1 %vm1770_vm1, %v1197_v51 }
 0x1d2   : > { %3804 = vmatpush3.bf16.xpose.msra.mxu1 %v2005_v40  ;;  %3805 = vmatprep.mubr.msk.bf16.mxu1 %vm4090_vm0, %v4086_v23 }
 0x1d3   : > { %3815 = vmatprep.subr.bf16.mxu1 %v4086_v23 }
 0x1d9   : > { %3806 = vmatmul.mubr.msk.bf16.vlgmr.msra.gmra.mrb[20].mxu1 %vm1770_vm1, %v1203_v21 }
 0x1da   : > { %3816 = vmatpush3.bf16.xpose.msra.mxu1 %v2097_v58  ;;  %3817 = vmatprep.mubr.msk.bf16.mxu1 %vm4090_vm0, %v4086_v23 }
 0x1db   : > { %3827 = vmatprep.subr.bf16.mxu1 %v4086_v23 }
 0x1e1   : > { %3818 = vmatmul.mubr.msk.bf16.vlgmr.msra.gmra.mrb[24].mxu1 %vm1770_vm1, %v1209_v61 }
 0x1e2   : > { %3829 = vmatprep.mubr.msk.bf16.mxu1 %vm4090_vm0, %v4086_v23 }
 0x28c   : > { %v1811_v11 = vpop.f32.mrb[4].mxu1 }
 0x28d   : > { %v2146_v30 = vsel %vm4463_vm2, %v1811_v11, -1e+30  ;;  %v3777_v12 = vpop.f32.mrb[5].mxu1 }
 0x28e   : > { %v1814_v13 = vpop.f32.mrb[6].mxu1  ;;  %v1995_v14 = vpop.f32.mrb[4].mxu0  ;;  %v2155_v15 = vsel %vm2154_vm3, %v2146_v30, -inf }
 0x28f   : > { %2156 = vmax.xlane.f32.xlu0 %v2155_v15  ;;  %v3778_v16 = vpop.f32.mrb[7].mxu1  ;;  %v3801_v17 = vpop.f32.mrb[5].mxu0  ;;  %v4475_v19 = vsel %vm4463_vm2, %v1995_v14, -1e+30 }
 0x290   : > { %v1998_v22 = vpop.f32.mrb[6].mxu0  ;;  %v2167_v37 = vsel %vm2154_vm3, %v4475_v19, -inf }
 0x291   : > { %v3802_v26 = vpop.f32.mrb[7].mxu0 }
 0x294   : > { %v1857_v24 = vpop.f32.mrb[8].mxu1 }
 0x295   : > { %v2147_v27 = vsel %vm4463_vm2, %v1857_v24, -1e+30  ;;  %v3783_v28 = vpop.f32.mrb[9].mxu1 }
 0x296   : > { %v1860_v29 = vpop.f32.mrb[10].mxu1  ;;  %v2087_v25 = vpop.f32.mrb[8].mxu0  ;;  %v2158_v32 = vsel %vm2154_vm3, %v2147_v27, -inf }
 0x297   : > { %2159 = vmax.xlane.f32.xlu1 %v2158_v32  ;;  %v3784_v33 = vpop.f32.mrb[11].mxu1  ;;  %v3813_v20 = vpop.f32.mrb[9].mxu0  ;;  %v4481_v38 = vsel %vm4463_vm2, %v2087_v25, -1e+30 }
 0x298   : > { %v2090_v35 = vpop.f32.mrb[10].mxu0  ;;  %v2173_v43 = vsel %vm2154_vm3, %v4481_v38, -inf }
 0x299   : > { %v3814_v36 = vpop.f32.mrb[11].mxu0 }
 0x29b   : > { %2168 = vmax.xlane.f32.xlu1 %v2167_v37 }
 0x29c   : > { %v1903_v39 = vpop.f32.mrb[12].mxu1 }
 0x29d   : > { %v2148_v31 = vsel %vm4463_vm2, %v1903_v39, -1e+30  ;;  %v3789_v18 = vpop.f32.mrb[13].mxu1 }
 0x29e   : > { %v1906_v41 = vpop.f32.mrb[14].mxu1  ;;  %v2161_v42 = vsel %vm2154_vm3, %v2148_v31, -inf }
 0x29f   : > { %2162 = vmax.xlane.f32.xlu0 %v2161_v42  ;;  %v3790_v44 = vpop.f32.mrb[15].mxu1  ;;  %2174 = vmax.xlane.f32.xlu1 %v2173_v43 }
 0x2a4   : > { %v1949_v45 = vpop.f32.mrb[16].mxu1 }
 0x2a5   : > { %v2149_v46 = vsel %vm4463_vm2, %v1949_v45, -1e+30  ;;  %v3795_v47 = vpop.f32.mrb[17].mxu1 }
 0x2a6   : > { %v1952_v48 = vpop.f32.mrb[18].mxu1  ;;  %v2164_v49 = vsel %vm2154_vm3, %v2149_v46, -inf }
 0x2a7   : > { %2165 = vmax.xlane.f32.xlu0 %v2164_v49  ;;  %v3796_v50 = vpop.f32.mrb[19].mxu1 }
 0x2ac   : > { %v2041_v51 = vpop.f32.mrb[20].mxu1 }
 0x2ad   : > { %v2151_v40 = vsel %vm4463_vm2, %v2041_v51, -1e+30  ;;  %v3807_v52 = vpop.f32.mrb[21].mxu1  ;;  %v1502_v51 = vshrl.u32 %v4459_v8, 16 }
 0x2ae   : > { %v2044_v34 = vpop.f32.mrb[22].mxu1  ;;  %v2170_v54 = vsel %vm2154_vm3, %v2151_v40, -inf }
 0x2af   : > { %2171 = vmax.xlane.f32.xlu0 %v2170_v54  ;;  %v3808_v55 = vpop.f32.mrb[23].mxu1 }
 0x2b0   : > { %1492 = vrot.lane.b32.xlu1 %v4459_v8, %s4088_s27 }
 0x2b4   : > { %v2133_v56 = vpop.f32.mrb[24].mxu1 }
 0x2b5   : > { %v2153_v21 = vsel %vm4463_vm2, %v2133_v56, -1e+30  ;;  %v3819_v58 = vpop.f32.mrb[25].mxu1 }
 0x2b6   : > { %v2136_v59 = vpop.f32.mrb[26].mxu1  ;;  %v2176_v60 = vsel %vm2154_vm3, %v2153_v21, -inf }
 0x2b7   : > { %2177 = vmax.xlane.f32.xlu0 %v2176_v60  ;;  %v3820_v61 = vpop.f32.mrb[27].mxu1 }
 0x31c   : > { %v2157_v62 = vpop.xlane.xlu0 %2156 }
 0x31d   : > { %v2179_v0 = vsub.f32 %v2146_v30, %v2157_v62 }
 0x31f   : > { %v2187_v1 = vmul.f32 1.442695, %v2179_v0 }
 0x321   : > { %4019 = vpow2.f32 %v2187_v1 }
 0x324   : > { %v2160_v2 = vpop.xlane.xlu1 %2159 }
 0x325   : > { %v2180_v3 = vsub.f32 %v2147_v27, %v2160_v2 }
 0x327   : > { %v2189_v5 = vmul.f32 1.442695, %v2180_v3 }
 0x328   : > { %v2169_v17 = vpop.xlane.xlu1 %2168 }
 0x329   : > { %4021 = vpow2.f32 %v2189_v5  ;;  %v2183_v28 = vsub.f32 %v4475_v19, %v2169_v17 }
 0x32b   : > { %v4499_v6 = vpop.eup %4019  ;;  %v2195_v32 = vmul.f32 1.442695, %v2183_v28 }
 0x32c   : > { %v2203_v7 = vsel %vm2154_vm3, %v4499_v6, 0.0  ;;  %v2163_v11 = vpop.xlane.xlu0 %2162  ;;  %v2175_v25 = vpop.xlane.xlu1 %2174 }
 0x32d   : > { %2204 = vadd.xlane.f32.xlu1 %v2203_v7  ;;  %v2181_v12 = vsub.f32 %v2148_v31, %v2163_v11  ;;  %v2185_v33 = vsub.f32 %v4481_v38, %v2175_v25 }
 0x32f   : > { %v2191_v14 = vmul.f32 1.442695, %v2181_v12  ;;  %v2199_v35 = vmul.f32 1.442695, %v2185_v33 }
 0x330   : > { %v1493_v45 = vpop.permute.xlu1 %1492 }
 0x331   : > { %4023 = vpow2.f32 %v2191_v14  ;;  %v1503_v48 = vshrl.u32 %v1493_v45, 16  ;;  %v4538_v50 = vpack.i.b16 %v1493_v45, %v4459_v8 }
 0x333   : > { %v4503_v9 = vpop.eup %4021  ;;  %v1504_v55 = vpack.i.b16 %v1503_v48, %v1502_v51  ;;  %v1521_v56 = vrot.slane %v4538_v50, %v4312_v57 }
 0x334   : > { %v2206_v10 = vsel %vm2154_vm3, %v4503_v9, 0.0  ;;  %v2166_v30 = vpop.xlane.xlu0 %2165 }
 0x335   : > { %2207 = vadd.xlane.f32.xlu0 %v2206_v10  ;;  %v2182_v22 = vsub.f32 %v2149_v46, %v2166_v30  ;;  %v1587_v61 = vrot.slane %v1504_v55, %v4312_v57 }
 0x337   : > { %v2193_v27 = vmul.f32 1.442695, %v2182_v22 }
 0x33b   : > { %v4513_v20 = vpop.eup %4023 }
 0x33c   : > { %v2172_v13 = vpop.xlane.xlu0 %2171  ;;  %v2209_v36 = vsel %vm2154_vm3, %v4513_v20, 0.0 }
 0x33d   : > { %v2184_v15 = vsub.f32 %v2151_v40, %v2172_v13 }
 0x33e   : > { %1496 = vrot.lane.b32.xlu1 %v4459_v8, %s4087_s5 }
 0x33f   : > { %v2197_v26 = vmul.f32 1.442695, %v2184_v15 }
 0x341   : > { %4025 = vpow2.f32 %v2197_v26 }
 0x342   : > { %4027 = vpow2.f32 %v2193_v27 }
 0x344   : > { %v2178_v16 = vpop.xlane.xlu0 %2177 }
 0x345   : > { %v2186_v24 = vsub.f32 %v2153_v21, %v2178_v16 }
 0x347   : > { %v2201_v29 = vmul.f32 1.442695, %v2186_v24 }
 0x349   : > { %4029 = vpow2.f32 %v2201_v29 }
 0x34a   : > { %4031 = vpow2.f32 %v2195_v32 }
 0x34b   : > { %1494 = vrot.lane.b32.xlu0 %v4459_v8, %s4089_s19  ;;  %v4517_v37 = vpop.eup %4025  ;;  %4033 = vpow2.f32 %v2199_v35 }
 0x34c   : > { %v4519_v19 = vpop.eup %4027  ;;  %v2218_v39 = vsel %vm2154_vm3, %v4517_v37, 0.0 }
 0x34d   : > { %v2212_v38 = vsel %vm2154_vm3, %v4519_v19, 0.0 }
 0x353   : > { %v4523_v31 = vpop.eup %4029 }
 0x354   : > { %v2224_v18 = vsel %vm2154_vm3, %v4523_v31, 0.0  ;;  %v4529_v41 = vpop.eup %4031 }
 0x355   : > { %v2215_v42 = vsel %vm2154_vm3, %v4529_v41, 0.0  ;;  %v4533_v43 = vpop.eup %4033 }
 0x356   : > { %v2221_v44 = vsel %vm2154_vm3, %v4533_v43, 0.0 }
 0x362   : > { %2210 = vadd.xlane.f32.xlu1 %v2209_v36 }
 0x366   : > { %2219 = vadd.xlane.f32.xlu1 %v2218_v39 }
 0x36a   : > { %2213 = vadd.xlane.f32.xlu0 %v2212_v38  ;;  %2225 = vadd.xlane.f32.xlu1 %v2224_v18 }
 0x36e   : > { %2216 = vadd.xlane.f32.xlu0 %v2215_v42 }
 0x372   : > { %2222 = vadd.xlane.f32.xlu0 %v2221_v44 }
 0x3ba   : > { %v2205_v46 = vpop.xlane.xlu1 %2204 }
 0x3bb   : > { %4035 = vrcp.f32 %v2205_v46  ;;  %v1580_v46 = vcombine.high %v1504_v55, %v4309_v53 }
 0x3be   : > { %v1497_v49 = vpop.permute.xlu1 %1496 }
 0x3bf   : > { %v1511_v52 = vshrl.u32 %v1497_v49, 16 }
 0x3c2   : > { %v2208_v47 = vpop.xlane.xlu0 %2207 }
 0x3c3   : > { %4037 = vrcp.f32 %v2208_v47 }
 0x3c5   : > { %v4036_v22 = vpop.eup %4035 }
 0x3c6   : > { %v1495_v40 = vpop.permute.xlu0 %1494  ;;  %v2235_v29 = vmul.f32 %v4036_v22, %v4499_v6 }
 0x3c7   : > { %v1508_v34 = vpack.i.b16 %v1497_v49, %v1495_v40  ;;  %v1510_v54 = vshrl.u32 %v1495_v40, 16 }
 0x3c8   : > { %v2243_v48 = vpack.c.bf16 %v2235_v29, %v2235_v29 }
 0x3c9   : > { %v1512_v21 = vpack.i.b16 %v1511_v52, %v1510_v54  ;;  %v1536_v58 = vrot.slane %v1508_v34, %v4312_v57  ;;  %v1529_v6 = vcombine.high %v1508_v34, %v4309_v53  ;;  %v1594_v34 = vrot.slane %v1580_v46, %v4312_v57 }
 0x3cb   : > { %v1544_v59 = vcombine.low %v1521_v56, %v1536_v58  ;;  %v1545_v60 = vcombine.high %v1521_v56, %v1536_v58  ;;  %v1602_v62 = vrot.slane %v1512_v21, %v4312_v57  ;;  %v1595_v39 = vcombine.high %v1512_v21, %v4309_v53 }
 0x3cc   : > { %v1543_v54 = vrot.slane %v1529_v6, %v4312_v57 }
 0x3cd   : > { %v1552_v8 = vrot.slane %v1544_v59, %v4316_v63  ;;  %v1559_v0 = vrot.slane %v1545_v60, %v4316_v63  ;;  %v1610_v1 = vcombine.low %v1587_v61, %v1602_v62  ;;  %v1611_v2 = vcombine.high %v1587_v61, %v1602_v62  ;;  %v4038_v27 = vpop.eup %4037 }
 0x3ce   : > { %v2236_v36 = vmul.f32 %v4038_v27, %v4503_v9  ;;  %v1514_v9 = vcombine.high %v4538_v50, %v4309_v53  ;;  %v1609_v51 = vrot.slane %v1595_v39, %v4312_v57 }
 0x3cf   : > { %v1646_v3 = vcombine.low %v1552_v8, %v1559_v0  ;;  %v3620_v5 = vcombine.high %v1552_v8, %v1559_v0  ;;  %v1618_v7 = vrot.slane %v1610_v1, %v4316_v63  ;;  %v1625_v10 = vrot.slane %v1611_v2, %v4316_v63 }
 0x3d0   : > { %v2244_v52 = vpack.c.bf16 %v2236_v36, %v2236_v36  ;;  %v1528_v50 = vrot.slane %v1514_v9, %v4312_v57  ;;  %v1626_v55 = vcombine.low %v1594_v34, %v1609_v51  ;;  %v1627_v56 = vcombine.high %v1594_v34, %v1609_v51 }
 0x3d1   : > { %v1653_v11 = vrot.slane %v1646_v3, %v4312_v57  ;;  %v1661_v30 = vrot.slane %v3620_v5, %v4312_v57  ;;  %v1671_v12 = vcombine.low %v1618_v7, %v1625_v10  ;;  %v3621_v13 = vcombine.high %v1618_v7, %v1625_v10 }
 0x3d2   : > { %v1560_v21 = vcombine.low %v1528_v50, %v1543_v54  ;;  %v1561_v58 = vcombine.high %v1528_v50, %v1543_v54  ;;  %v1634_v59 = vrot.slane %v1626_v55, %v4316_v63  ;;  %v1641_v60 = vrot.slane %v1627_v56, %v4316_v63  ;;  %v3995_v50 = vld [vmem:[%s4193_s18] sm:$0xff]   ;;  %v3997_v55 = vld [vmem:[%s4193_s18 + $0x10] sm:$0xff]   ;;  %v3998_v56 = vld [vmem:[%s4193_s18 + $0x18] sm:$0xff]  }
 0x3d3   : > { %v1662_v14 = vcombine.low %v1653_v11, %v1661_v30  ;;  %v1678_v15 = vrot.slane %v1671_v12, %v4312_v57  ;;  %v1686_v16 = vrot.slane %v3621_v13, %v4312_v57 }
 0x3d4   : > { %v1568_v61 = vrot.slane %v1560_v21, %v4316_v63  ;;  %v1575_v62 = vrot.slane %v1561_v58, %v4316_v63  ;;  %v1721_v8 = vcombine.low %v1634_v59, %v1641_v60  ;;  %v3623_v0 = vcombine.high %v1634_v59, %v1641_v60  ;;  %v3999_v21 = vld [vmem:[%s4193_s18 + $0x20] sm:$0xff]   ;;  %v4000_v58 = vld [vmem:[%s4193_s18 + $0x28] sm:$0xff]   ;;  %v4001_v59 = vld [vmem:[%s4193_s18 + $0x30] sm:$0xff]  }
 0x3d5   : > { %v1669_v17 = vrot.slane %v1662_v14, %v4316_v63  ;;  %v1687_v26 = vcombine.low %v1678_v15, %v1686_v16 }
 0x3d6   : > { %v1696_v1 = vcombine.low %v1568_v61, %v1575_v62  ;;  %v3622_v2 = vcombine.high %v1568_v61, %v1575_v62  ;;  %v1728_v5 = vrot.slane %v1721_v8, %v4312_v57  ;;  %v1736_v7 = vrot.slane %v3623_v0, %v4312_v57 }
 0x3d7   : > { %v1670_v24 = vcombine.high %v1669_v17, %v4085_v4  ;;  %v1694_v28 = vrot.slane %v1687_v26, %v4316_v63  ;;  %v1749_v32 = vshrl.u32 %v1669_v17, 16 }
 0x3d8   : > { %v1703_v10 = vrot.slane %v1696_v1, %v4312_v57  ;;  %v1711_v11 = vrot.slane %v3622_v2, %v4312_v57  ;;  %v1737_v30 = vcombine.low %v1728_v5, %v1736_v7 }
 0x3d9   : > { %v1748_v25 = vpack.i.b16 %v1694_v28, %v1669_v17  ;;  %v1750_v33 = vshrl.u32 %v1694_v28, 16  ;;  %v1695_v35 = vcombine.high %v1694_v28, %v4085_v4  ;;  %v1755_v38 = vshrl.u32 %v1670_v24, 16 }
 0x3da   : > { %v1712_v12 = vcombine.low %v1703_v10, %v1711_v11  ;;  %v1744_v14 = vrot.slane %v1737_v30, %v4316_v63 }
 0x3db   : > { %v2256_v18 = vsel %vm2254_vm4, %v1748_v25, 0  ;;  %v1751_v42 = vpack.i.b16 %v1750_v33, %v1749_v32  ;;  %v1754_v44 = vpack.i.b16 %v1695_v35, %v1670_v24  ;;  %v1756_v45 = vshrl.u32 %v1695_v35, 16 }
 0x3dc   : > { %3822 = vmatpush3.bf16.msra.mxu0 %v2256_v18  ;;  %v1719_v16 = vrot.slane %v1712_v12, %v4316_v63  ;;  %v1762_v25 = vshrl.u32 %v1744_v14, 16  ;;  %v1745_v39 = vcombine.high %v1744_v14, %v4085_v4 }
 0x3dd   : > { %v2302_v47 = vsel %vm2254_vm4, %v1751_v42, 0  ;;  %3833 = vmatprep.subr.bf16.mxu0 %v4086_v23  ;;  %v1757_v49 = vpack.i.b16 %v1756_v45, %v1755_v38  ;;  %v2348_v40 = vsel %vm2254_vm4, %v1754_v44, 0 }
 0x3de   : > { %3828 = vmatpush3.bf16.msra.mxu1 %v2302_v47  ;;  %v1760_v24 = vpack.i.b16 %v1744_v14, %v1719_v16  ;;  %v1761_v33 = vshrl.u32 %v1719_v16, 16  ;;  %v1720_v42 = vcombine.high %v1719_v16, %v4085_v4  ;;  %v1768_v47 = vshrl.u32 %v1745_v39, 16 }
 0x3df   : > { %3824 = vmatmul.mubr.msk.bf16.vlgmr.msra.gmra.mrb[12].mxu0 %vm2154_vm3, %v2243_v48  ;;  %3839 = vmatprep.subr.bf16.mxu1 %v4086_v23  ;;  %v2394_v53 = vsel %vm2254_vm4, %v1757_v49, 0 }
 0x3e0   : > { %3834 = vmatpush3.bf16.msra.mxu0 %v2348_v40  ;;  %3835 = vmatprep.mubr.msk.bf16.mxu0 %vm4090_vm0, %v4086_v23  ;;  %v2440_v29 = vsel %vm2254_vm4, %v1760_v24, 0  ;;  %v1763_v36 = vpack.i.b16 %v1762_v25, %v1761_v33  ;;  %v1766_v6 = vpack.i.b16 %v1745_v39, %v1720_v42  ;;  %v1767_v49 = vshrl.u32 %v1720_v42, 16 }
 0x3e1   : > { %3830 = vmatmul.mubr.msk.bf16.vlgmr.msra.gmra.mrb[28].mxu1 %vm2154_vm3, %v2244_v52  ;;  %3845 = vmatprep.subr.bf16.mxu0 %v4086_v23 }
 0x3e2   : > { %3840 = vmatpush3.bf16.msra.mxu1 %v2394_v53  ;;  %3841 = vmatprep.mubr.msk.bf16.mxu1 %vm4090_vm0, %v4086_v23  ;;  %v2486_v46 = vsel %vm2254_vm4, %v1763_v36, 0  ;;  %v1769_v51 = vpack.i.b16 %v1768_v47, %v1767_v49 }
 0x3e3   : > { %3851 = vmatprep.subr.bf16.mxu1 %v4086_v23 }
 0x3e4   : > { %v2578_v34 = vsel %vm2254_vm4, %v1769_v51, 0 }
 0x3ef   : > { %v2211_v3 = vpop.xlane.xlu1 %2210 }
 0x3f0   : > { %4039 = vrcp.f32 %v2211_v3 }
 0x3f3   : > { %v2220_v15 = vpop.xlane.xlu1 %2219 }
 0x3f7   : > { %v2214_v13 = vpop.xlane.xlu0 %2213  ;;  %v2226_v32 = vpop.xlane.xlu1 %2225 }
 0x3f8   : > { %4041 = vrcp.f32 %v2214_v13 }
 0x3f9   : > { %4043 = vrcp.f32 %v2220_v15 }
 0x3fa   : > { %v4040_v17 = vpop.eup %4039 }
 0x3fb   : > { %v2237_v22 = vmul.f32 %v4040_v17, %v4513_v20  ;;  %v2217_v26 = vpop.xlane.xlu0 %2216 }
 0x3fc   : > { %4045 = vrcp.f32 %v2217_v26 }
 0x3fd   : > { %v2245_v27 = vpack.c.bf16 %v2237_v22, %v2237_v22 }
 0x3ff   : > { %v2223_v28 = vpop.xlane.xlu0 %2222  ;;  %3836 = vmatmul.mubr.msk.bf16.vlgmr.msra.gmra.mrb[16].mxu0 %vm2154_vm3, %v2245_v27 }
 0x400   : > { %4047 = vrcp.f32 %v2223_v28  ;;  %3846 = vmatpush3.bf16.msra.mxu0 %v2440_v29  ;;  %3847 = vmatprep.mubr.msk.bf16.mxu0 %vm4090_vm0, %v4086_v23 }
 0x401   : > { %3857 = vmatprep.subr.bf16.mxu0 %v4086_v23  ;;  %4049 = vrcp.f32 %v2226_v32 }
 0x402   : > { %v4042_v20 = vpop.eup %4041 }
 0x403   : > { %v2238_v35 = vmul.f32 %v4042_v20, %v4519_v19  ;;  %v4044_v38 = vpop.eup %4043 }
 0x404   : > { %v2240_v19 = vmul.f32 %v4044_v38, %v4517_v37 }
 0x405   : > { %v2246_v18 = vpack.c.bf16 %v2238_v35, %v2238_v35 }
 0x406   : > { %v4046_v44 = vpop.eup %4045  ;;  %v2248_v52 = vpack.c.bf16 %v2240_v19, %v2240_v19 }
 0x407   : > { %v2239_v45 = vmul.f32 %v4046_v44, %v4529_v41  ;;  %3842 = vmatmul.mubr.msk.bf16.vlgmr.msra.gmra.mrb[32].mxu1 %vm2154_vm3, %v2246_v18  ;;  %v2532_v41 = vsel %vm2254_vm4, %v1766_v6, 0 }
 0x408   : > { %3852 = vmatpush3.bf16.msra.mxu1 %v2486_v46  ;;  %3853 = vmatprep.mubr.msk.bf16.mxu1 %vm4090_vm0, %v4086_v23 }
 0x409   : > { %v2247_v48 = vpack.c.bf16 %v2239_v45, %v2239_v45  ;;  %3863 = vmatprep.subr.bf16.mxu1 %v4086_v23 }
 0x40a   : > { %v4048_v9 = vpop.eup %4047 }
 0x40b   : > { %3848 = vmatmul.mubr.msk.bf16.vlgmr.msra.gmra.mrb[20].mxu0 %vm2154_vm3, %v2247_v48  ;;  %v2241_v40 = vmul.f32 %v4048_v9, %v4533_v43  ;;  %v4050_v37 = vpop.eup %4049 }
 0x40c   : > { %3858 = vmatpush3.bf16.msra.mxu0 %v2532_v41  ;;  %3859 = vmatprep.mubr.msk.bf16.mxu0 %vm4090_vm0, %v4086_v23  ;;  %v2242_v54 = vmul.f32 %v4050_v37, %v4523_v31  ;;  %v3996_v31 = vld [vmem:[%s4193_s18 + $0x8] sm:$0xff]  }
 0x40d   : > { %3869 = vmatprep.subr.bf16.mxu0 %v4086_v23  ;;  %v2249_v53 = vpack.c.bf16 %v2241_v40, %v2241_v40 }
 0x40e   : > { %v2250_v43 = vpack.c.bf16 %v2242_v54, %v2242_v54 }
 0x40f   : > { %3854 = vmatmul.mubr.msk.bf16.vlgmr.msra.gmra.mrb[36].mxu1 %vm2154_vm3, %v2248_v52 }
 0x410   : > { %3864 = vmatpush3.bf16.msra.mxu1 %v2578_v34  ;;  %3865 = vmatprep.mubr.msk.bf16.mxu1 %vm4090_vm0, %v4086_v23 }
 0x411   : > { %3889 = vmatprep.subr.bf16.mxu1 %v4086_v23 }
 0x413   : > { %3860 = vmatmul.mubr.msk.bf16.vlgmr.msra.gmra.mrb[24].mxu0 %vm2154_vm3, %v2249_v53 }
 0x414   : > { %3885 = vmatprep.mubr.msk.bf16.mxu0 %vm4090_vm0, %v4086_v23  ;;  %3870 = vmatpush3.bf16.msra.mxu0 %v3995_v50 }
 0x415   : > { %3871 = vmatprep.subr.bf16.mxu0 %v4086_v23 }
 0x417   : > { %3866 = vmatmul.mubr.msk.bf16.vlgmr.msra.gmra.mrb[40].mxu1 %vm2154_vm3, %v2250_v43 }
 0x418   : > { %3905 = vmatprep.mubr.msk.bf16.mxu1 %vm4090_vm0, %v4086_v23  ;;  %3872 = vmatpush3.bf16.msra.mxu0 %v3996_v31 }
 0x419   : > { %3873 = vmatprep.subr.bf16.mxu0 %v4086_v23 }
 0x41c   : > { %3874 = vmatpush3.bf16.msra.mxu0 %v3997_v55 }
 0x41d   : > { %3875 = vmatprep.subr.bf16.mxu0 %v4086_v23 }
 0x420   : > { %3876 = vmatpush3.bf16.msra.mxu0 %v3998_v56 }
 0x421   : > { %3877 = vmatprep.subr.bf16.mxu0 %v4086_v23 }
 0x424   : > { %3878 = vmatpush3.bf16.msra.mxu0 %v3999_v21 }
 0x425   : > { %3879 = vmatprep.subr.bf16.mxu0 %v4086_v23 }
 0x428   : > { %3880 = vmatpush3.bf16.msra.mxu0 %v4000_v58 }
 0x429   : > { %3881 = vmatprep.subr.bf16.mxu0 %v4086_v23 }
 0x42c   : > { %3882 = vmatpush3.bf16.msra.mxu0 %v4001_v59 }
 0x42d   : > { %3883 = vmatprep.subr.bf16.mxu0 %v4086_v23 }
 0x4b2   : > { %v2292_v60 = vpop.f32.mrb[12].mxu0 }
 0x4b3   : > { %v3825_v61 = vpop.f32.mrb[13].mxu0  ;;  %v2620_v5 = vpack.c.bf16 %v2292_v60, %v2292_v60 }
 0x4b4   : > { %v2295_v62 = vpop.f32.mrb[14].mxu0  ;;  %v2338_v8 = vpop.f32.mrb[28].mxu1 }
 0x4b5   : > { %v3826_v0 = vpop.f32.mrb[15].mxu0  ;;  %v3831_v1 = vpop.f32.mrb[29].mxu1  ;;  %v2627_v12 = vrot.slane %v2620_v5, %v4312_v57  ;;  %v2654_v17 = vpack.c.bf16 %v2338_v8, %v2338_v8 }
 0x4b6   : > { %v2341_v2 = vpop.f32.mrb[30].mxu1 }
 0x4b7   : > { %v3832_v3 = vpop.f32.mrb[31].mxu1  ;;  %v2661_v32 = vrot.slane %v2654_v17, %v4312_v57 }
 0x4d2   : > { %v2384_v7 = vpop.f32.mrb[16].mxu0 }
 0x4d3   : > { %v2628_v10 = vpack.c.bf16 %v2384_v7, %v2384_v7  ;;  %v3837_v11 = vpop.f32.mrb[17].mxu0 }
 0x4d4   : > { %v2387_v30 = vpop.f32.mrb[18].mxu0 }
 0x4d5   : > { %v2635_v13 = vrot.slane %v2628_v10, %v4312_v57  ;;  %v3838_v14 = vpop.f32.mrb[19].mxu0 }
 0x4d7   : > { %v2636_v15 = vcombine.low %v2627_v12, %v2635_v13  ;;  %v2637_v16 = vcombine.high %v2627_v12, %v2635_v13 }
 0x4d9   : > { %v2644_v26 = vrot.slane %v2636_v15, %v4316_v63  ;;  %v2651_v29 = vrot.slane %v2637_v16, %v4316_v63 }
 0x4da   : > { %v2430_v22 = vpop.f32.mrb[32].mxu1 }
 0x4db   : > { %v3843_v24 = vpop.f32.mrb[33].mxu1  ;;  %v2662_v27 = vpack.c.bf16 %v2430_v22, %v2430_v22  ;;  %v2652_v35 = vcombine.high %v2644_v26, %v4085_v4  ;;  %v2653_v42 = vcombine.high %v2651_v29, %v4085_v4  ;;  %v2760_v47 = vshrl.u32 %v2644_v26, 16 }
 0x4dc   : > { %v2433_v28 = vpop.f32.mrb[34].mxu1  ;;  %v2776_v48 = vshrl.u32 %v2651_v29, 16 }
 0x4dd   : > { %v3844_v25 = vpop.f32.mrb[35].mxu1  ;;  %v2669_v33 = vrot.slane %v2662_v27, %v4312_v57  ;;  %v2768_v19 = vshrl.u32 %v2652_v35, 16  ;;  %v2784_v37 = vshrl.u32 %v2653_v42, 16 }
 0x4de   : > { %v2476_v20 = vpop.f32.mrb[20].mxu0 }
 0x4df   : > { %v3849_v36 = vpop.f32.mrb[21].mxu0  ;;  %v2670_v39 = vcombine.low %v2661_v32, %v2669_v33  ;;  %v2671_v38 = vcombine.high %v2661_v32, %v2669_v33  ;;  %v2688_v53 = vpack.c.bf16 %v2476_v20, %v2476_v20 }
 0x4e0   : > { %v2479_v18 = vpop.f32.mrb[22].mxu0 }
 0x4e1   : > { %v3850_v44 = vpop.f32.mrb[23].mxu0  ;;  %v2678_v45 = vrot.slane %v2670_v39, %v4316_v63  ;;  %v2685_v46 = vrot.slane %v2671_v38, %v4316_v63  ;;  %v2695_v3 = vrot.slane %v2688_v53, %v4312_v57 }
 0x4e2   : > { %v2522_v6 = vpop.f32.mrb[36].mxu1 }
 0x4e3   : > { %v3855_v49 = vpop.f32.mrb[37].mxu1  ;;  %v2686_v9 = vcombine.high %v2678_v45, %v4085_v4  ;;  %v2687_v41 = vcombine.high %v2685_v46, %v4085_v4  ;;  %v2758_v51 = vpack.i.b16 %v2678_v45, %v2644_v26  ;;  %v2761_v40 = vshrl.u32 %v2678_v45, 16 }
 0x4e4   : > { %v2525_v52 = vpop.f32.mrb[38].mxu1  ;;  %v2774_v34 = vpack.i.b16 %v2685_v46, %v2651_v29  ;;  %v2777_v54 = vshrl.u32 %v2685_v46, 16  ;;  %v2722_v11 = vpack.c.bf16 %v2522_v6, %v2522_v6 }
 0x4e5   : > { %v3856_v43 = vpop.f32.mrb[39].mxu1  ;;  %v2762_v50 = vpack.i.b16 %v2761_v40, %v2760_v47  ;;  %v2766_v31 = vpack.i.b16 %v2686_v9, %v2652_v35  ;;  %v2769_v55 = vshrl.u32 %v2686_v9, 16  ;;  %v2782_v56 = vpack.i.b16 %v2687_v41, %v2653_v42 }
 0x4e6   : > { %v2568_v21 = vpop.f32.mrb[24].mxu0  ;;  %v2778_v58 = vpack.i.b16 %v2777_v54, %v2776_v48  ;;  %v2785_v59 = vshrl.u32 %v2687_v41, 16  ;;  %v2820_v60 = vcombine.low %v2758_v51, %v2774_v34  ;;  %v2729_v25 = vrot.slane %v2722_v11, %v4312_v57 }
 0x4e7   : > { %v2696_v61 = vpack.c.bf16 %v2568_v21, %v2568_v21  ;;  %v3861_v62 = vpop.f32.mrb[25].mxu0  ;;  %v2770_v8 = vpack.i.b16 %v2769_v55, %v2768_v19  ;;  %v2828_v1 = vcombine.low %v2766_v31, %v2782_v56 }
 0x4e8   : > { %v2571_v0 = vpop.f32.mrb[26].mxu0  ;;  %v2786_v2 = vpack.i.b16 %v2785_v59, %v2784_v37  ;;  %v2870_v10 = vcombine.low %v2762_v50, %v2778_v58  ;;  %v2827_v12 = vrot.slane %v2820_v60, %v4312_v57  ;;  %v4002_v60 = vld [vmem:[%s4193_s18 + $0x38] sm:$0xff]  }
 0x4e9   : > { %v2703_v5 = vrot.slane %v2696_v61, %v4312_v57  ;;  %v3862_v7 = vpop.f32.mrb[27].mxu0  ;;  %v2835_v13 = vrot.slane %v2828_v1, %v4312_v57  ;;  %3884 = vmatpush3.bf16.msra.mxu0 %v4002_v60 }
 0x4ea   : > { %v2614_v30 = vpop.f32.mrb[40].mxu1  ;;  %v2878_v24 = vcombine.low %v2770_v8, %v2786_v2  ;;  %v2877_v32 = vrot.slane %v2870_v10, %v4312_v57  ;;  %3909 = vmatprep.subr.bf16.mxu0 %v4086_v23 }
 0x4eb   : > { %v2704_v14 = vcombine.low %v2695_v3, %v2703_v5  ;;  %v2705_v15 = vcombine.high %v2695_v3, %v2703_v5  ;;  %v2730_v16 = vpack.c.bf16 %v2614_v30, %v2614_v30  ;;  %v3867_v17 = vpop.f32.mrb[41].mxu1  ;;  %v2852_v26 = vcombine.low %v2827_v12, %v2835_v13 }
 0x4ec   : > { %v2617_v22 = vpop.f32.mrb[42].mxu1  ;;  %v2885_v33 = vrot.slane %v2878_v24, %v4312_v57 }
 0x4ed   : > { %v2712_v27 = vrot.slane %v2704_v14, %v4316_v63  ;;  %v2737_v28 = vrot.slane %v2730_v16, %v4312_v57  ;;  %v3868_v29 = vpop.f32.mrb[43].mxu1  ;;  %v2719_v20 = vrot.slane %v2705_v15, %v4316_v63  ;;  %v2859_v8 = vrot.slane %v2852_v26, %v4316_v63 }
 0x4ee   : > { %v2902_v39 = vcombine.low %v2877_v32, %v2885_v33  ;;  %v3640_v29 = vld [vmem:[%s4797_s0] ss:$0 sm:$0xff] }
 0x4ef   : > { %v2738_v35 = vcombine.low %v2729_v25, %v2737_v28  ;;  %v2739_v36 = vcombine.high %v2729_v25, %v2737_v28  ;;  %v2720_v38 = vcombine.high %v2712_v27, %v4085_v4  ;;  %v2721_v44 = vcombine.high %v2719_v20, %v4085_v4 }
 0x4f0   : > { %v2792_v45 = vshrl.u32 %v2712_v27, 16  ;;  %v2808_v49 = vshrl.u32 %v2719_v20, 16  ;;  %v2909_v5 = vrot.slane %v2902_v39, %v4316_v63  ;;  %v4059_v39 = vld [vmem:[#allocation2] sm:$0xff] }
 0x4f1   : > { %v2746_v18 = vrot.slane %v2738_v35, %v4316_v63  ;;  %v2753_v42 = vrot.slane %v2739_v36, %v4316_v63  ;;  %v2800_v48 = vshrl.u32 %v2720_v38, 16  ;;  %v2816_v34 = vshrl.u32 %v2721_v44, 16 }
 0x4f3   : > { %v2754_v46 = vcombine.high %v2746_v18, %v4085_v4  ;;  %v2755_v6 = vcombine.high %v2753_v42, %v4085_v4  ;;  %v2790_v47 = vpack.i.b16 %v2746_v18, %v2712_v27  ;;  %v2793_v19 = vshrl.u32 %v2746_v18, 16  ;;  %v4060_v18 = vld [vmem:[#allocation2 + $0x8] sm:$0xff] }
 0x4f4   : > { %v2806_v9 = vpack.i.b16 %v2753_v42, %v2719_v20  ;;  %v2809_v41 = vshrl.u32 %v2753_v42, 16 }
 0x4f5   : > { %v2794_v51 = vpack.i.b16 %v2793_v19, %v2792_v45  ;;  %v2798_v40 = vpack.i.b16 %v2754_v46, %v2720_v38  ;;  %v2801_v52 = vshrl.u32 %v2754_v46, 16  ;;  %v2814_v37 = vpack.i.b16 %v2755_v6, %v2721_v44  ;;  %v4003_v44 = vld [vmem:[%s4212_s16] sm:$0xff]  }
 0x4f6   : > { %v2810_v54 = vpack.i.b16 %v2809_v41, %v2808_v49  ;;  %v2817_v53 = vshrl.u32 %v2755_v6, 16  ;;  %v2836_v43 = vcombine.low %v2790_v47, %v2806_v9  ;;  %3890 = vmatpush3.bf16.msra.mxu1 %v4003_v44  ;;  %v4004_v41 = vld [vmem:[%s4212_s16 + $0x8] sm:$0xff]  }
 0x4f7   : > { %v2802_v50 = vpack.i.b16 %v2801_v52, %v2800_v48  ;;  %v2844_v31 = vcombine.low %v2798_v40, %v2814_v37  ;;  %3891 = vmatprep.subr.bf16.mxu1 %v4086_v23  ;;  %v4006_v40 = vld [vmem:[%s4212_s16 + $0x18] sm:$0xff]   ;;  %v4007_v52 = vld [vmem:[%s4212_s16 + $0x20] sm:$0xff]   ;;  %v4008_v37 = vld [vmem:[%s4212_s16 + $0x28] sm:$0xff]  }
 0x4f8   : > { %v2818_v55 = vpack.i.b16 %v2817_v53, %v2816_v34  ;;  %v2886_v56 = vcombine.low %v2794_v51, %v2810_v54  ;;  %v2843_v4 = vrot.slane %v2836_v43, %v4312_v57  ;;  %v4005_v51 = vld [vmem:[%s4212_s16 + $0x10] sm:$0xff]   ;;  %v4011_v54 = vld [vmem:[%s4221_s1] sm:$0xff]   ;;  %v4010_v53 = vld [vmem:[%s4212_s16 + $0x38] sm:$0xff]  }
 0x4f9   : > { %v2851_v21 = vrot.slane %v2844_v31, %v4312_v57  ;;  %v4009_v34 = vld [vmem:[%s4212_s16 + $0x30] sm:$0xff]   ;;  %v4012_v43 = vld [vmem:[%s4221_s1 + $0x8] sm:$0xff]   ;;  %v4014_v31 = vld [vmem:[%s4221_s1 + $0x18] sm:$0xff]  }
 0x4fa   : > { %v2894_v58 = vcombine.low %v2802_v50, %v2818_v55  ;;  %v2893_v61 = vrot.slane %v2886_v56, %v4312_v57  ;;  %3892 = vmatpush3.bf16.msra.mxu1 %v4004_v41  ;;  %v4013_v50 = vld [vmem:[%s4221_s1 + $0x10] sm:$0xff]   ;;  %v4015_v55 = vld [vmem:[%s4221_s1 + $0x20] sm:$0xff]   ;;  %v4016_v56 = vld [vmem:[%s4221_s1 + $0x28] sm:$0xff]  }
 0x4fb   : > { %v2860_v59 = vcombine.low %v2843_v4, %v2851_v21  ;;  %3893 = vmatprep.subr.bf16.mxu1 %v4086_v23 }
 0x4fc   : > { %v2901_v62 = vrot.slane %v2894_v58, %v4312_v57 }
 0x4fd   : > { %v2867_v0 = vrot.slane %v2860_v59, %v4316_v63 }
 0x4fe   : > { %v2910_v1 = vcombine.low %v2893_v61, %v2901_v62  ;;  %3894 = vmatpush3.bf16.msra.mxu1 %v4005_v51 }
 0x4ff   : > { %v2869_v2 = vcombine.high %v2859_v8, %v2867_v0  ;;  %v2868_v3 = vcombine.low %v2859_v8, %v2867_v0  ;;  %3895 = vmatprep.subr.bf16.mxu1 %v4086_v23  ;;  %v3649_v0 = vld [vmem:[%s635_s24] ss:$0 sm:$0xff] }
 0x500   : > { %v2917_v7 = vrot.slane %v2910_v1, %v4316_v63 }
 0x501   : > { %v2923_v30 = vshrl.u32 %v2868_v3, 16  ;;  %v2929_v12 = vshrl.u32 %v2869_v2, 16 }
 0x502   : > { %v2919_v10 = vcombine.high %v2909_v5, %v2917_v7  ;;  %v2918_v11 = vcombine.low %v2909_v5, %v2917_v7  ;;  %3896 = vmatpush3.bf16.msra.mxu1 %v4006_v40  ;;  %v3650_v5 = vld [vmem:[%s638_s2] ss:$0 sm:$0xff] }
 0x503   : > { %3897 = vmatprep.subr.bf16.mxu1 %v4086_v23  ;;  %v3669_v40 = vld [vmem:[%s641_s17] ss:$0 sm:$0xff] }
 0x504   : > { %v2928_v13 = vpack.i.b16 %v2919_v10, %v2869_v2  ;;  %v2924_v57 = vshrl.u32 %v2918_v11, 16  ;;  %v2930_v14 = vshrl.u32 %v2919_v10, 16  ;;  %v2922_v15 = vpack.i.b16 %v2918_v11, %v2868_v3 }
 0x506   : > { %2934 = vrot.lane.b32.xlu1 %v2928_v13, %s4089_s19  ;;  %v2925_v16 = vpack.i.b16 %v2924_v57, %v2923_v30  ;;  %v2931_v17 = vpack.i.b16 %v2930_v14, %v2929_v12  ;;  %3898 = vmatpush3.bf16.msra.mxu1 %v4007_v52  ;;  %v4017_v12 = vld [vmem:[%s4221_s1 + $0x30] sm:$0xff]   ;;  %v4018_v13 = vld [vmem:[%s4221_s1 + $0x38] sm:$0xff]   ;;  %v3651_v57 = vld [vmem:[%s4798_s22] ss:$0 sm:$0xff] }
 0x507   : > { %3899 = vmatprep.subr.bf16.mxu1 %v4086_v23 }
 0x508   : > { %2932 = vrot.lane.b32.xlu0 %v2925_v16, %s4087_s5 }
 0x50a   : > { %2936 = vrot.lane.b32.xlu1 %v2931_v17, %s4088_s27  ;;  %3900 = vmatpush3.bf16.msra.mxu1 %v4008_v37 }
 0x50b   : > { %3901 = vmatprep.subr.bf16.mxu1 %v4086_v23 }
 0x50e   : > { %3902 = vmatpush3.bf16.msra.mxu1 %v4009_v34  ;;  %v3670_v34 = vld [vmem:[%s644_s14] ss:$0 sm:$0xff] }
 0x50f   : > { %3903 = vmatprep.subr.bf16.mxu1 %v4086_v23 }
 0x512   : > { %3904 = vmatpush3.bf16.msra.mxu1 %v4010_v53 }
 0x578   : > { %v2935_v22 = vpop.permute.xlu1 %2934 }
 0x57a   : > { %v2933_v63 = vpop.permute.xlu0 %2932 }
 0x57b   : > { %v2940_v26 = vsel %vm1770_vm1, %v2922_v15, %v2933_v63 }
 0x57c   : > { %v2937_v24 = vpop.permute.xlu1 %2936  ;;  %v2943_v27 = vsel %vm2941_vm5, %v2940_v26, %v2935_v22 }
 0x57d   : > { %v2946_v28 = vsel %vm2944_vm6, %v2943_v27, %v2937_v24 }
 0x57e   : > { %3886 = vmatmul.mubr.bf16.vlgmr.msra.gmra.mrb[28].mxu0 %v2946_v28 }
 0x57f   : > { %3925 = vmatprep.mubr.msk.bf16.mxu0 %vm4090_vm0, %v4086_v23  ;;  %3910 = vmatpush3.bf16.msra.mxu0 %v4011_v54 }
 0x580   : > { %3911 = vmatprep.subr.bf16.mxu0 %v4086_v23 }
 0x583   : > { %3912 = vmatpush3.bf16.msra.mxu0 %v4012_v43 }
 0x584   : > { %3913 = vmatprep.subr.bf16.mxu0 %v4086_v23 }
 0x587   : > { %3914 = vmatpush3.bf16.msra.mxu0 %v4013_v50 }
 0x588   : > { %3915 = vmatprep.subr.bf16.mxu0 %v4086_v23 }
 0x58b   : > { %3916 = vmatpush3.bf16.msra.mxu0 %v4014_v31 }
 0x58c   : > { %3917 = vmatprep.subr.bf16.mxu0 %v4086_v23 }
 0x58f   : > { %3918 = vmatpush3.bf16.msra.mxu0 %v4015_v55 }
 0x590   : > { %3919 = vmatprep.subr.bf16.mxu0 %v4086_v23 }
 0x593   : > { %3920 = vmatpush3.bf16.msra.mxu0 %v4016_v56 }
 0x594   : > { %3921 = vmatprep.subr.bf16.mxu0 %v4086_v23 }
 0x597   : > { %3922 = vmatpush3.bf16.msra.mxu0 %v4017_v12 }
 0x598   : > { %3923 = vmatprep.subr.bf16.mxu0 %v4086_v23  ;;  %v3660_v23 = vld [vmem:[%s632_s26] ss:$0 sm:$0xff] }
 0x59b   : > { %3924 = vmatpush3.bf16.msra.mxu0 %v4018_v13 }
 0x651   : > { %v3053_v25 = vpop.f32.mrb[28].mxu0 }
 0x652   : > { %v3054_v32 = vadd.f32 %v3640_v29, %v3053_v25  ;;  %v3887_v33 = vpop.f32.mrb[29].mxu0 }
 0x653   : > { %v3056_v20 = vpop.f32.mrb[30].mxu0 }
 0x654   : > { %v3057_v35 = vadd.f32 %v3640_v29, %v3056_v20  ;;  %v3888_v36 = vpop.f32.mrb[31].mxu0  ;;  %v3060_v38 = vadd.f32 %v4059_v39, %v3054_v32 }
 0x656   : > { %3064 = vadd.xlane.f32.xlu0 %v3060_v38  ;;  %v3061_v42 = vadd.f32 %v4060_v18, %v3057_v35 }
 0x658   : > { %3066 = vadd.xlane.f32.xlu1 %v3061_v42 }
 0x6e3   : > { %v3065_v45 = vpop.xlane.xlu0 %3064 }
 0x6e4   : > { %v3069_v46 = vmul.f32 0.0078125, %v3065_v45 }
 0x6e5   : > { %v3067_v6 = vpop.xlane.xlu1 %3066 }
 0x6e6   : > { %v3071_v47 = vsub.f32 %v3060_v38, %v3069_v46  ;;  %v3070_v19 = vmul.f32 0.0078125, %v3067_v6 }
 0x6e8   : > { %v3072_v48 = vsub.f32 %v3061_v42, %v3070_v19  ;;  %v3073_v49 = vmul.f32 %v3071_v47, %v3071_v47 }
 0x6ea   : > { %3075 = vadd.xlane.f32.xlu0 %v3073_v49  ;;  %v3074_v9 = vmul.f32 %v3072_v48, %v3072_v48 }
 0x6ee   : > { %3077 = vadd.xlane.f32.xlu0 %v3074_v9 }
 0x777   : > { %v3076_v4 = vpop.xlane.xlu0 %3075 }
 0x778   : > { %v3079_v21 = vmul.f32 0.0078125, %v3076_v4 }
 0x77a   : > { %v3081_v58 = vadd.f32 1e-05, %v3079_v21 }
 0x77b   : > { %v3078_v59 = vpop.xlane.xlu0 %3077 }
 0x77c   : > { %4051 = vrsqrt.f32 %v3081_v58  ;;  %v3080_v60 = vmul.f32 0.0078125, %v3078_v59 }
 0x77e   : > { %v3082_v61 = vadd.f32 1e-05, %v3080_v60 }
 0x780   : > { %4053 = vrsqrt.f32 %v3082_v61 }
 0x786   : > { %v4052_v62 = vpop.eup %4051 }
 0x787   : > { %v3085_v8 = vmul.f32 %v4052_v62, %v3071_v47 }
 0x789   : > { %v3093_v3 = vmul.f32 %v3649_v0, %v3085_v8 }
 0x78a   : > { %v4054_v1 = vpop.eup %4053 }
 0x78b   : > { %v3086_v2 = vmul.f32 %v4054_v1, %v3072_v48  ;;  %v3101_v10 = vadd.f32 %v3650_v5, %v3093_v3 }
 0x78d   : > { %v3094_v7 = vmul.f32 %v3649_v0, %v3086_v2 }
 0x78f   : > { %v3102_v11 = vadd.f32 %v3650_v5, %v3094_v7 }
 0x791   : > { %v3103_v30 = vpack.c.bf16 %v3102_v11, %v3101_v10 }
 0x793   : > { %3906 = vmatmul.mubr.bf16.vlgmr.msra.gmra.mrb[44].mxu1 %v3103_v30 }
 0x866   : > { %v3209_v14 = vpop.f32.mrb[44].mxu1 }
 0x867   : > { %v3210_v15 = vadd.f32 %v3651_v57, %v3209_v14  ;;  %v3907_v16 = vpop.f32.mrb[45].mxu1 }
 0x868   : > { %v3212_v17 = vpop.f32.mrb[46].mxu1 }
 0x869   : > { %v3213_v22 = vadd.f32 %v3651_v57, %v3212_v17  ;;  %v3908_v63 = vpop.f32.mrb[47].mxu1  ;;  %v3216_v26 = vmax.f32 %v3210_v15, 0.0 }
 0x86b   : > { %v3217_v24 = vmax.f32 %v3213_v22, 0.0 }
 0x86d   : > { %v3218_v27 = vpack.c.bf16 %v3217_v24, %v3216_v26 }
 0x86f   : > { %3926 = vmatmul.mubr.bf16.vlgmr.msra.gmra.mrb[32].mxu0 %v3218_v27 }
 0x942   : > { %v3324_v28 = vpop.f32.mrb[32].mxu0 }
 0x943   : > { %v3325_v29 = vadd.f32 %v3660_v23, %v3324_v28  ;;  %v3927_v25 = vpop.f32.mrb[33].mxu0 }
 0x944   : > { %v3327_v32 = vpop.f32.mrb[34].mxu0 }
 0x945   : > { %v3328_v33 = vadd.f32 %v3660_v23, %v3327_v32  ;;  %v3928_v20 = vpop.f32.mrb[35].mxu0  ;;  %v3331_v35 = vadd.f32 %v3325_v29, %v3101_v10 }
 0x947   : > { %3335 = vadd.xlane.f32.xlu1 %v3331_v35  ;;  %v3332_v36 = vadd.f32 %v3328_v33, %v3102_v11 }
 0x949   : > { %3337 = vadd.xlane.f32.xlu0 %v3332_v36 }
 0x9d4   : > { %v3336_v39 = vpop.xlane.xlu1 %3335 }
 0x9d5   : > { %v3339_v38 = vmul.f32 0.0078125, %v3336_v39 }
 0x9d6   : > { %v3338_v18 = vpop.xlane.xlu0 %3337 }
 0x9d7   : > { %v3341_v42 = vsub.f32 %v3331_v35, %v3339_v38  ;;  %v3340_v44 = vmul.f32 0.0078125, %v3338_v18 }
 0x9d9   : > { %v3342_v45 = vsub.f32 %v3332_v36, %v3340_v44  ;;  %v3343_v46 = vmul.f32 %v3341_v42, %v3341_v42 }
 0x9db   : > { %3345 = vadd.xlane.f32.xlu1 %v3343_v46  ;;  %v3344_v6 = vmul.f32 %v3342_v45, %v3342_v45 }
 0x9dd   : > { %3347 = vadd.xlane.f32.xlu0 %v3344_v6 }
 0xa68   : > { %v3346_v47 = vpop.xlane.xlu1 %3345 }
 0xa69   : > { %v3349_v19 = vmul.f32 0.0078125, %v3346_v47 }
 0xa6a   : > { %v3348_v48 = vpop.xlane.xlu0 %3347 }
 0xa6b   : > { %v3351_v49 = vadd.f32 1e-05, %v3349_v19  ;;  %v3350_v9 = vmul.f32 0.0078125, %v3348_v48 }
 0xa6d   : > { %4055 = vrsqrt.f32 %v3351_v49  ;;  %v3352_v41 = vadd.f32 1e-05, %v3350_v9 }
 0xa6f   : > { %4057 = vrsqrt.f32 %v3352_v41 }
 0xa77   : > { %v4056_v51 = vpop.eup %4055 }
 0xa78   : > { %v3355_v52 = vmul.f32 %v4056_v51, %v3341_v42  ;;  %3376 = sbr.rel (%p3671_p6) target bundleno = 2689 (0xa81), region = 80 }
 0xa79   : > { %v4058_v37 = vpop.eup %4057 }
 0xa7a   : > { %v3363_v54 = vmul.f32 %v3669_v40, %v3355_v52  ;;  %v3356_v53 = vmul.f32 %v4058_v37, %v3342_v45 }
 0xa7c   : > { %v3371_v43 = vadd.f32 %v3670_v34, %v3363_v54  ;;  %v3364_v50 = vmul.f32 %v3669_v40, %v3356_v53 }
 0xa7e   : > { %v3372_v31 = vadd.f32 %v3670_v34, %v3364_v50  ;;  %3377 = vst [vmem:[#allocation2] sm:$0xff] (!%p3671_p6), %v3371_v43 }
 0xa80   : > { %3378 = vst [vmem:[#allocation2 + $0x8] sm:$0xff] %v3372_v31 }
 0xa81 PF: > { %p3672_p7 = scmp.ne.s32.totalorder %s4075_s25, 1 }
 0xa82   : > { %v3683_v55 = vpack.c.bf16 (!%p3672_p7), %v3372_v31, %v3371_v43  ;;  %s4799_s19 = sld [smem:[#allocation11_spill]] (!%p3672_p7) }
 0xa83   : > { %3382 = sbr.rel (%p3672_p7) target bundleno = 2698 (0xa8a), region = 84 }
 0xa88   : > { %3684 = vst [vmem:[%s4799_s19] sm:$0xff] (!%p3672_p7), %v3683_v55  }
 0xa8a PF: > { %s4800_s29 = sld [smem:[#allocation4_spill]]  ;;  %s4801_s25 = sld [smem:[#allocation3_spill]] }
 0xa8b   : > { %s4802_s26 = sld [smem:[#allocation5_spill]] }
 0xa90   : > { %s23_s27 = sadd.s32 1, %s4800_s29  }
 0xa91   : > { %p20_p8 = scmp.ge.s32.totalorder %s23_s27, 4  }
 0xa93   :  { %22 = sbr.rel (!%p20_p8) target bundleno = 7 (0x7), region = 150 }

</bundles_post_ra>
